<compile_context>
chip_gen: v7x
topology: tpu7x:2x2x1
jax: 0.10.0
libtpu: 0.0.40
codegen_flags: <defaults>
</compile_context>

<pallas_src>
import math
from math import prod

import jax
import jax.numpy as jnp
from jax.experimental import pallas as pl
from jax.experimental.pallas import tpu as pltpu


def _softplus(x):
    # numerically stable softplus (matches torch.nn.functional.softplus);
    # works in f32 or bf16.
    return jnp.maximum(x, 0.0) + jnp.log(1.0 + jnp.exp(-jnp.abs(x)))


def _is_v5():
    try:
        return "v5" in jax.devices()[0].device_kind.lower()
    except Exception:
        return True  # conservative default: f32 softplus is safe everywhere


def _make_kernel(act_width, tproj_widths, softplus_dtype):
    """Builds the fused kernel for one tile of packed rows.

    refs = (xin, bias, W0_fused, R_0..R_{L-1}, out)
      xin   : [tm, G*F]      bf16  packed [x | t | u] rows
      bias  : [1, Wtot]      f32   packed [ba | bt_0 | ... | bt_{L-1}]
      W0    : [G*F, Wtot]    bf16  fused fan-out + all node time projections
      R_k   : [G*cur, G*nxt] bf16  block-diag sparse reduction matrices
      out   : [tm, G*N]      f32   packed output activations (lane-dense)
    All slice offsets/widths are static multiples of 128 lanes.
    """
    def kernel(xin_ref, bias_ref, w0_ref, *rest):
        r_refs, o_ref = rest[:-1], rest[-1]
        xin = xin_ref[...]                                      # [tm, G*F] bf16

        # One matmul produces every xin-dependent pre-activation (fan-out axon
        # + time + input projections AND each node's time projection).
        pre_all = jnp.dot(xin, w0_ref[...],
                          preferred_element_type=jnp.float32)
        pre_all = pre_all + bias_ref[...]                       # [tm, Wtot] f32

        # Fan-out nonlinearity on the first act_width lanes only.
        act = _softplus(pre_all[:, :act_width].astype(softplus_dtype))
        act = act.astype(jnp.bfloat16)

        # Dendritic integration nodes, distal -> proximal.
        # TODO(synk): the block-diag R matmuls still multiply ~(Bk*G-1)/(Bk*G)
        # structural zeros; a VPU-mul + pltpu.roll lane reduction would remove
        # that inflation if more MXU headroom is ever needed.
        off = act_width
        n_nodes = len(r_refs)
        for i in range(n_nodes):
            w = tproj_widths[i]
            tproj = pre_all[:, off:off + w]                     # raw, no softplus
            off += w
            pre = jnp.dot(act, r_refs[i][...],
                          preferred_element_type=jnp.float32) + tproj
            if i + 1 < n_nodes:
                act = _softplus(pre.astype(softplus_dtype)).astype(jnp.bfloat16)
            else:
                o_ref[...] = _softplus(pre)                     # final layer in f32
    return kernel


def init_params(key, N, bfs, input_size, temb):
    """Deterministic synthetic params in the same layout as the torch module."""
    D1 = N * prod(bfs)
    keys = jax.random.split(key, 4 + 3 * len(bfs))
    p = {
        'Wa': jax.random.normal(keys[0], (D1, N), jnp.float32) * 0.1,
        'ba': jax.random.normal(keys[1], (D1,), jnp.float32) * 0.1,
        'Wt': jax.random.normal(keys[2], (D1, temb), jnp.float32) * 0.1,
        'Wi': jax.random.normal(keys[3], (D1, input_size), jnp.float32) * 0.1,
        'nodes': [],
    }
    ki = 4
    # application order: Node(bfs[:L]), Node(bfs[:L-1]), ..., Node(bfs[:1])
    for k in range(len(bfs), 0, -1):
        bf_sub = bfs[:k]
        out = N * prod(bf_sub[:-1])
        pw = jax.random.normal(keys[ki], (N,) + tuple(bf_sub), jnp.float32) * 0.3
        wt = jax.random.normal(keys[ki + 1], (out, temb), jnp.float32) * 0.1
        bt = jax.random.normal(keys[ki + 2], (out,), jnp.float32) * 0.1
        ki += 3
        p['nodes'].append((pw, wt, bt))
    return p


def reference_forward(p, x, t_emb, u, N, bfs):
    """Pure-JAX (f32) transcription of the PyTorch forward (for validation)."""
    pre = x @ p['Wa'].T + p['ba'] + (t_emb @ p['Wt'].T) + u @ p['Wi'].T
    act = _softplus(pre).reshape(x.shape[:-1] + (N,) + tuple(bfs))
    for i, k in enumerate(range(len(bfs), 0, -1)):
        pw, wt, bt = p['nodes'][i]
        dend = (pw * act).sum(-1)
        tproj = (t_emb @ wt.T + bt).reshape((t_emb.shape[0], N) + tuple(bfs[:k - 1]))
        act = _softplus(dend + tproj)
    return act


def _build_packed_weights(p, N, bfs, temb, input_size, G):
    """Build the fused layer-0 weight, per-node reduction matrices and bias row.

    Packed layout (G logical rows per physical row):
      xin lanes : group g occupies [g*F, (g+1)*F) = [x_g | t_g | u_g]
      W0_fused output lanes: [ act (G*D1) | tproj_0 (G*n_1) | ... | tproj_L ]
        with each block group-major (kron(eye(G), .)), so every block boundary
        is a multiple of 128 lanes (G*N % 128 == 0 by construction of G).
    The logical flattening of every tree-stage feature axis is the torch
    row-major (n, b1, ..., bk) flattening, so reductions are expressed as
    matrices R[j, j // Bk] = pw_flat[j] with no permutations needed.
    """
    F = N + temb + input_size                       # no ones column: bias in-kernel
    D1 = N * prod(bfs)
    eyeG = jnp.eye(G, dtype=jnp.float32)

    # Fan-out block: [x | t | u] @ w0 -> D1 pre-activations.
    w0 = jnp.concatenate([p['Wa'].T, p['Wt'].T, p['Wi'].T], axis=0)     # [F, D1]
    fused_blocks = [jnp.kron(eyeG, w0)]             # output lanes [0, G*D1)
    bias_parts = [jnp.tile(p['ba'], G)]
    r_mats = []
    tproj_widths = []

    cur = D1
    for i, k in enumerate(range(len(bfs), 0, -1)):
        pw, wt, bt = p['nodes'][i]
        Bk = bfs[k - 1]
        nxt = cur // Bk
        # "Scale by propagation weights and reduce over the last branching
        # factor" as one sparse matmul: R[j, j // Bk] = pw_flat[j].
        pw_flat = pw.reshape(-1)                    # row-major (n, b1..bk) flatten
        R = jnp.zeros((cur, nxt), jnp.float32)
        R = R.at[jnp.arange(cur), jnp.arange(cur) // Bk].set(pw_flat)
        r_mats.append(jnp.kron(eyeG, R))
        # Node time projection, fused into the layer-0 matmul output lanes.
        wt_l = jnp.concatenate(
            [jnp.zeros((N, nxt), jnp.float32),      # x part unused
             wt.T,                                  # time projection
             jnp.zeros((input_size, nxt), jnp.float32)], axis=0)        # [F, nxt]
        fused_blocks.append(jnp.kron(eyeG, wt_l))
        bias_parts.append(jnp.tile(bt, G))
        tproj_widths.append(G * nxt)
        cur = nxt

    w0_fused = jnp.concatenate(fused_blocks, axis=1).astype(jnp.bfloat16)
    bias = jnp.concatenate(bias_parts)[None, :].astype(jnp.float32)     # [1, Wtot]
    r_mats = [r.astype(jnp.bfloat16) for r in r_mats]
    return w0_fused, bias, r_mats, tuple(tproj_widths), G * D1, F


def dendritic_forward(p, x, t_emb, u, N, bfs, temb, input_size, tm=1024):
    """tm = packed rows per grid step (each packed row holds G logical rows)."""
    lead = x.shape[:-2]
    T = x.shape[-2]
    M = prod(lead) * T

    # G logical rows per packed row so G*N is a multiple of 128 (lane-dense out).
    G = 128 // math.gcd(N, 128)

    w0_fused, bias, r_mats, tproj_widths, act_width, F = _build_packed_weights(
        p, N, bfs, temb, input_size, G)

    # Single concatenated bf16 row stream [x | t | u] (biases added in-kernel).
    # TODO(synk): t rows are still broadcast across the batch dims (small
    # redundant HBM read); a per-T lookup would remove it at extra complexity.
    x_flat = x.reshape(M, N)
    u_flat = u.reshape(M, input_size)
    t_rows = jnp.broadcast_to(t_emb, lead + (T, temb)).reshape(M, temb)
    xin = jnp.concatenate([x_flat, t_rows, u_flat], axis=-1).astype(jnp.bfloat16)

    # Pad row count (no divisibility requirement) and pack G rows per row.
    P = pl.cdiv(M, G)
    # Clamp the tile so it never exceeds the padded row count and so the 1-D
    # "parallel" grid keeps >= 2 steps whenever possible (uses both
    # TensorCores on megacore parts like v7x, and bounds the per-TC working
    # set well under v7x's 64 MiB VMEM).
    half = -(-P // 2)
    tm = max(8, min(tm, ((half + 7) // 8) * 8))
    P_pad = ((P + tm - 1) // tm) * tm
    M_pad = P_pad * G
    xin = jnp.pad(xin, ((0, M_pad - M), (0, 0)))
    xin_packed = xin.reshape(P_pad, G * F)

    # bf16 softplus on v6e/v7x (bf16 VPU/EUP); f32 on v5e.
    softplus_dtype = jnp.float32 if _is_v5() else jnp.bfloat16
    kernel = _make_kernel(act_width, tproj_widths, softplus_dtype)

    weights = [w0_fused] + r_mats
    # TODO(synk): mark the constant-weight specs pipeline_mode=pl.Buffered(1)
    # (their index_map is always (0,0)) to drop the redundant second buffer;
    # skipped here to keep compilation risk at zero on this JAX pin.
    in_specs = ([pl.BlockSpec((tm, G * F), lambda i: (i, 0)),
                 pl.BlockSpec(bias.shape, lambda i: (0, 0))]
                + [pl.BlockSpec(w.shape, lambda i: (0, 0)) for w in weights])

    out = pl.pallas_call(
        kernel,
        out_shape=jax.ShapeDtypeStruct((P_pad, G * N), jnp.float32),
        grid_spec=pltpu.PrefetchScalarGridSpec(
            num_scalar_prefetch=0,
            grid=(P_pad // tm,),
            in_specs=in_specs,
            out_specs=pl.BlockSpec((tm, G * N), lambda i: (i, 0)),
        ),
        compiler_params=pltpu.CompilerParams(
            dimension_semantics=("parallel",),
            vmem_limit_bytes=48 * 1024 * 1024,
        ),
    )(xin_packed, bias, *weights)

    # Unpack: packed row p, group g, neuron c  ->  logical row p*G + g.
    return out.reshape(M_pad, N)[:M].reshape(lead + (T, N))


if __name__ == "__main__":
    # DendriticResidualModel(state_space_size=8, branching_factors=[3, 2],
    #                        input_size=5, time_embedding_size=6)
    N = 8
    bfs = (3, 2)
    input_size = 5
    temb = 6
    B, T = 2, 8

    key = jax.random.PRNGKey(0)
    kp, kx, kt, ku = jax.random.split(key, 4)
    params = init_params(kp, N, bfs, input_size, temb)

    x = jax.random.normal(kx, (B, T, N), jnp.float32)
    t_emb = jax.random.normal(kt, (T, temb), jnp.float32)
    u = jax.random.normal(ku, (B, T, input_size), jnp.float32)

    out = dendritic_forward(params, x, t_emb, u, N, bfs, temb, input_size)
    out = jax.block_until_ready(out)

    ref = reference_forward(params, x, t_emb, u, N, bfs)
    assert out.shape == ref.shape == (B, T, N)
    max_err = float(jnp.max(jnp.abs(out - ref)))
    # bf16 matmuls / bf16 softplus vs the f32 reference: loosened tolerance.
    assert jnp.allclose(out, ref, atol=5e-2, rtol=5e-2), max_err

    print("KERNEL_OK")
</pallas_src>

<mosaic_0001>
module attributes {stable_mosaic.version = 11 : i64} {
  func.func @kernel(%arg0: i32, %arg1: memref<8x304xbf16, #tpu.memory_space<vmem>>, %arg2: memref<1x1280xf32, #tpu.memory_space<vmem>>, %arg3: memref<304x1280xbf16, #tpu.memory_space<vmem>>, %arg4: memref<768x384xbf16, #tpu.memory_space<vmem>>, %arg5: memref<384x128xbf16, #tpu.memory_space<vmem>>, %arg6: memref<8x128xf32, #tpu.memory_space<vmem>>) attributes {dimension_semantics = [#tpu.dimension_semantics<parallel>], iteration_bounds = array<i64: 1>, scalar_prefetch = 0 : i64, scratch_operands = 0 : i64, tpu.core_type = #tpu.core_type<tc>, window_params = [{transform_indices = @transform_0, window_bounds = array<i64: 8, 304>}, {pipeline_mode = #tpu.pipeline_mode<synchronous>, transform_indices = @transform_1, window_bounds = array<i64: 1, 1280>}, {pipeline_mode = #tpu.pipeline_mode<synchronous>, transform_indices = @transform_2, window_bounds = array<i64: 304, 1280>}, {pipeline_mode = #tpu.pipeline_mode<synchronous>, transform_indices = @transform_3, window_bounds = array<i64: 768, 384>}, {pipeline_mode = #tpu.pipeline_mode<synchronous>, transform_indices = @transform_4, window_bounds = array<i64: 384, 128>}, {transform_indices = @transform_5, window_bounds = array<i64: 8, 128>}]} {
    %c0 = arith.constant 0 : index
    %c0_0 = arith.constant 0 : index
    %0 = vector.load %arg1[%c0, %c0_0] : memref<8x304xbf16, #tpu.memory_space<vmem>>, vector<8x304xbf16>
    %c0_1 = arith.constant 0 : index
    %c0_2 = arith.constant 0 : index
    %1 = vector.load %arg3[%c0_1, %c0_2] : memref<304x1280xbf16, #tpu.memory_space<vmem>>, vector<304x1280xbf16>
    %cst = arith.constant dense<0.000000e+00> : vector<8x1280xf32>
    %2 = tpu.matmul %0, %1, %cst {dimension_numbers = #tpu.dot_dimension_numbers<[1], [0], [0], [1], [0, 0, 1, 1], [], []>} : vector<8x304xbf16>, vector<304x1280xbf16>, vector<8x1280xf32> -> vector<8x1280xf32>
    %c0_3 = arith.constant 0 : index
    %c0_4 = arith.constant 0 : index
    %3 = vector.load %arg2[%c0_3, %c0_4] : memref<1x1280xf32, #tpu.memory_space<vmem>>, vector<1x1280xf32>
    %4 = vector.broadcast %3 : vector<1x1280xf32> to vector<8x1280xf32>
    %5 = arith.addf %2, %4 : vector<8x1280xf32>
    %6 = vector.extract_strided_slice %5 {offsets = [0, 0], sizes = [8, 768], strides = [1, 1]} : vector<8x1280xf32> to vector<8x768xf32>
    %7 = arith.truncf %6 : vector<8x768xf32> to vector<8x768xbf16>
    %cst_5 = arith.constant 0.000000e+00 : bf16
    %8 = vector.broadcast %cst_5 : bf16 to vector<8x768xbf16>
    %9 = arith.maximumf %7, %8 : vector<8x768xbf16>
    %10 = math.absf %7 : vector<8x768xbf16>
    %cst_6 = arith.constant 0.000000e+00 : bf16
    %11 = vector.broadcast %cst_6 : bf16 to vector<8x768xbf16>
    %12 = arith.subf %11, %10 : vector<8x768xbf16>
    %13 = math.exp %12 : vector<8x768xbf16>
    %cst_7 = arith.constant 1.000000e+00 : bf16
    %14 = vector.broadcast %cst_7 : bf16 to vector<8x768xbf16>
    %15 = arith.addf %14, %13 : vector<8x768xbf16>
    %16 = math.log %15 : vector<8x768xbf16>
    %17 = arith.addf %9, %16 : vector<8x768xbf16>
    %18 = vector.extract_strided_slice %5 {offsets = [0, 768], sizes = [8, 384], strides = [1, 1]} : vector<8x1280xf32> to vector<8x384xf32>
    %c0_8 = arith.constant 0 : index
    %c0_9 = arith.constant 0 : index
    %19 = vector.load %arg4[%c0_8, %c0_9] : memref<768x384xbf16, #tpu.memory_space<vmem>>, vector<768x384xbf16>
    %cst_10 = arith.constant dense<0.000000e+00> : vector<8x384xf32>
    %20 = tpu.matmul %17, %19, %cst_10 {dimension_numbers = #tpu.dot_dimension_numbers<[1], [0], [0], [1], [0, 0, 1, 1], [], []>} : vector<8x768xbf16>, vector<768x384xbf16>, vector<8x384xf32> -> vector<8x384xf32>
    %21 = arith.addf %20, %18 : vector<8x384xf32>
    %22 = arith.truncf %21 : vector<8x384xf32> to vector<8x384xbf16>
    %cst_11 = arith.constant 0.000000e+00 : bf16
    %23 = vector.broadcast %cst_11 : bf16 to vector<8x384xbf16>
    %24 = arith.maximumf %22, %23 : vector<8x384xbf16>
    %25 = math.absf %22 : vector<8x384xbf16>
    %cst_12 = arith.constant 0.000000e+00 : bf16
    %26 = vector.broadcast %cst_12 : bf16 to vector<8x384xbf16>
    %27 = arith.subf %26, %25 : vector<8x384xbf16>
    %28 = math.exp %27 : vector<8x384xbf16>
    %cst_13 = arith.constant 1.000000e+00 : bf16
    %29 = vector.broadcast %cst_13 : bf16 to vector<8x384xbf16>
    %30 = arith.addf %29, %28 : vector<8x384xbf16>
    %31 = math.log %30 : vector<8x384xbf16>
    %32 = arith.addf %24, %31 : vector<8x384xbf16>
    %33 = vector.extract_strided_slice %5 {offsets = [0, 1152], sizes = [8, 128], strides = [1, 1]} : vector<8x1280xf32> to vector<8x128xf32>
    %c0_14 = arith.constant 0 : index
    %c0_15 = arith.constant 0 : index
    %34 = vector.load %arg5[%c0_14, %c0_15] : memref<384x128xbf16, #tpu.memory_space<vmem>>, vector<384x128xbf16>
    %cst_16 = arith.constant dense<0.000000e+00> : vector<8x128xf32>
    %35 = tpu.matmul %32, %34, %cst_16 {dimension_numbers = #tpu.dot_dimension_numbers<[1], [0], [0], [1], [0, 0, 1, 1], [], []>} : vector<8x384xbf16>, vector<384x128xbf16>, vector<8x128xf32> -> vector<8x128xf32>
    %36 = arith.addf %35, %33 : vector<8x128xf32>
    %cst_17 = arith.constant 0.000000e+00 : f32
    %37 = vector.broadcast %cst_17 : f32 to vector<8x128xf32>
    %38 = arith.maximumf %36, %37 : vector<8x128xf32>
    %39 = math.absf %36 : vector<8x128xf32>
    %cst_18 = arith.constant 0.000000e+00 : f32
    %40 = vector.broadcast %cst_18 : f32 to vector<8x128xf32>
    %41 = arith.subf %40, %39 : vector<8x128xf32>
    %42 = math.exp %41 : vector<8x128xf32>
    %cst_19 = arith.constant 1.000000e+00 : f32
    %43 = vector.broadcast %cst_19 : f32 to vector<8x128xf32>
    %44 = arith.addf %43, %42 : vector<8x128xf32>
    %45 = math.log %44 : vector<8x128xf32>
    %46 = arith.addf %38, %45 : vector<8x128xf32>
    %c0_20 = arith.constant 0 : index
    %c0_21 = arith.constant 0 : index
    %47 = vector.load %arg6[%c0_20, %c0_21] : memref<8x128xf32, #tpu.memory_space<vmem>>, vector<8x128xf32>
    tpu.vector_store %arg6[%c0_20, %c0_21], %46 {strides = array<i32>} : memref<8x128xf32, #tpu.memory_space<vmem>>, vector<8x128xf32>,
    return
  }
  func.func @transform_0(%arg0: i32) -> (i32, i32) {
    %c0_i32 = arith.constant 0 : i32
    %c0_i32_0 = arith.constant 0 : i32
    return %arg0, %c0_i32 : i32, i32
  }
  func.func @transform_1(%arg0: i32) -> (i32, i32) {
    %c0_i32 = arith.constant 0 : i32
    %c0_i32_0 = arith.constant 0 : i32
    %c0_i32_1 = arith.constant 0 : i32
    return %c0_i32, %c0_i32_0 : i32, i32
  }
  func.func @transform_2(%arg0: i32) -> (i32, i32) {
    %c0_i32 = arith.constant 0 : i32
    %c0_i32_0 = arith.constant 0 : i32
    %c0_i32_1 = arith.constant 0 : i32
    return %c0_i32, %c0_i32_0 : i32, i32
  }
  func.func @transform_3(%arg0: i32) -> (i32, i32) {
    %c0_i32 = arith.constant 0 : i32
    %c0_i32_0 = arith.constant 0 : i32
    %c0_i32_1 = arith.constant 0 : i32
    return %c0_i32, %c0_i32_0 : i32, i32
  }
  func.func @transform_4(%arg0: i32) -> (i32, i32) {
    %c0_i32 = arith.constant 0 : i32
    %c0_i32_0 = arith.constant 0 : i32
    %c0_i32_1 = arith.constant 0 : i32
    return %c0_i32, %c0_i32_0 : i32, i32
  }
  func.func @transform_5(%arg0: i32) -> (i32, i32) {
    %c0_i32 = arith.constant 0 : i32
    %c0_i32_0 = arith.constant 0 : i32
    return %arg0, %c0_i32 : i32, i32
  }
}

</mosaic_0001>

<bundles_post_ra>
// kernel: tpu_custom_call.1
= control target key start
LH: loop header
LB: loop body
LE: loop exit
PB: predicated region body
PF: predicated region fallthrough
CT: control target
= control target key end

     0   :  { %10 = vsyncpa [#allocation3], 0  ;;  %s4767_s0 = inlined_call_operand.hbm [shape: bf16[8,304], index: 0, kind: input, shape index: {}]   ;;  %s4768_s1 = inlined_call_operand.hbm [shape: f32[1,1280], index: 1, kind: input, shape index: {}]   ;;  %s4769_s2 = inlined_call_operand.hbm [shape: bf16[304,1280], index: 2, kind: input, shape index: {}]   ;;  %s4770_s3 = inlined_call_operand.hbm [shape: bf16[768,384], index: 3, kind: input, shape index: {}]   ;;  %s4771_s4 = inlined_call_operand.hbm [shape: bf16[384,128], index: 4, kind: input, shape index: {}]   ;;  %s4772_s5 = inlined_call_operand.hbm [shape: f32[8,128], index: 5, kind: output, shape index: {}]  }
   0x1   :  { %11 = vsyncpa [#allocation6], 0 }
   0x2   :  { %12 = vsyncpa [#allocation9], 0 }
   0x3   :  { %13 = vsyncpa [#allocation4], 0  ;;  %s4534_s18 = smov [#allocation5]   ;;  %s4535_s20 = smov [#allocation8]  }
   0x4   :  { %s30_s19 = sshll.u32 %s4534_s18, 4  ;;  %s51_s21 = sshll.u32 %s4535_s20, 4  ;;  %s31_s19 = int_to_ptr.vmem [resolvable:$true] %s30_s19  ;;  %s4579_s21 = int_to_ptr.vmem [resolvable:$true] %s51_s21 }
   0x5   :  { %s4394_s24 = scalar_lea.hbm %s4768_s1, 160 }
   0x6   :  { %p4395_p0 = scmp.ne.s32.totalorder %s4768_s1, %s4394_s24  ;;  %p4398_p1 = scmp.lt.u32.totalorder %s4394_s24, %s4768_s1 }
   0x8   :  { %p4400_p2 = pnand %p4398_p1, %p4395_p0 }
   0xa   :  { %4403 = shalt.err (!%p4400_p2)
}
   0xb   :  { %s4404_s29 = scalar_lea.vmem %s31_s19, 160  ;;  %p4409_p4 = scmp.lt.s32.totalorder %s31_s19, %s31_s19 }
   0xc   :  { %p4405_p3 = scmp.ne.s32.totalorder %s31_s19, %s4404_s29  ;;  %p4410_p5 = scmp.lt.s32.totalorder %s4404_s29, %s4404_s29 }
   0xe   :  { %p4411_p6 = por %p4410_p5, %p4409_p4 }
  0x10   :  { %p4412_p7 = pnand %p4411_p6, %p4405_p3 }
  0x12   :  { %4415 = shalt.err (!%p4412_p7)
}
  0x13   :  { %33 = dma.hbm_to_vmem [thread:$0]  %s4768_s1, 160, %s31_s19, [#allocation6]  }
  0x14   :  { %s4416_s9 = scalar_lea.hbm %s4770_s3, 18432 }
  0x15   :  { %p4417_p8 = scmp.ne.s32.totalorder %s4770_s3, %s4416_s9  ;;  %p4420_p9 = scmp.lt.u32.totalorder %s4416_s9, %s4770_s3 }
  0x17   :  { %p4422_p10 = pnand %p4420_p9, %p4417_p8 }
  0x19   :  { %4425 = shalt.err (!%p4422_p10)
}
  0x1a   :  { %s4426_s14 = scalar_lea.vmem %s4579_s21, 18432  ;;  %p4431_p12 = scmp.lt.s32.totalorder %s4579_s21, %s4579_s21 }
  0x1b   :  { %p4427_p11 = scmp.ne.s32.totalorder %s4579_s21, %s4426_s14  ;;  %p4432_p13 = scmp.lt.s32.totalorder %s4426_s14, %s4426_s14 }
  0x1d   :  { %p4433_p0 = por %p4432_p13, %p4431_p12 }
  0x1f   :  { %p4434_p1 = pnand %p4433_p0, %p4427_p11 }
  0x21   :  { %4437 = shalt.err (!%p4434_p1)
}
  0x22   :  { %s4536_s1 = smov 192   ;;  %s4537_s15 = smov 12  }
  0x23   :  { %57 = dma.hbm_to_vmem [thread:$0]  %s4770_s3, 18432, %s4579_s21, [#allocation9], %s4536_s1, %s4536_s1, %s4537_s15  }
  0x24   :  { %s4538_s18 = smov [#allocation2]   ;;  %s4539_s20 = smov [#allocation7]  }
  0x25   :  { %s20_s19 = sshll.u32 %s4538_s18, 4  ;;  %s39_s22 = sshll.u32 %s4539_s20, 4  ;;  %s21_s19 = int_to_ptr.vmem [resolvable:$true] %s20_s19  ;;  %s4610_s22 = int_to_ptr.vmem [resolvable:$true] %s39_s22 }
  0x26   :  { %s4438_s25 = scalar_lea.hbm %s4767_s0, 192 }
  0x27   :  { %p4439_p2 = scmp.ne.s32.totalorder %s4767_s0, %s4438_s25  ;;  %p4442_p3 = scmp.lt.u32.totalorder %s4438_s25, %s4767_s0 }
  0x29   :  { %p4444_p4 = pnand %p4442_p3, %p4439_p2 }
  0x2b   :  { %4447 = shalt.err (!%p4444_p4)
}
  0x2c   :  { %s4448_s3 = scalar_lea.vmem %s21_s19, 192  ;;  %p4453_p6 = scmp.lt.s32.totalorder %s21_s19, %s21_s19 }
  0x2d   :  { %p4449_p5 = scmp.ne.s32.totalorder %s21_s19, %s4448_s3  ;;  %p4454_p7 = scmp.lt.s32.totalorder %s4448_s3, %s4448_s3 }
  0x2f   :  { %p4455_p8 = por %p4454_p7, %p4453_p6 }
  0x31   :  { %p4456_p9 = pnand %p4455_p8, %p4449_p5 }
  0x33   :  { %4459 = shalt.err (!%p4456_p9)
}
  0x34   :  { %23 = dma.hbm_to_vmem [thread:$0]  %s4767_s0, 192, %s21_s19, [#allocation3]  }
  0x35   :  { %s4460_s8 = scalar_lea.hbm %s4769_s2, 24320 }
  0x36   :  { %p4461_p10 = scmp.ne.s32.totalorder %s4769_s2, %s4460_s8  ;;  %p4464_p11 = scmp.lt.u32.totalorder %s4460_s8, %s4769_s2 }
  0x38   :  { %p4466_p12 = pnand %p4464_p11, %p4461_p10 }
  0x3a   :  { %4469 = shalt.err (!%p4466_p12)
}
  0x3b   :  { %s4470_s13 = scalar_lea.vmem %s4610_s22, 24320  ;;  %p4475_p0 = scmp.lt.s32.totalorder %s4610_s22, %s4610_s22 }
  0x3c   :  { %p4471_p13 = scmp.ne.s32.totalorder %s4610_s22, %s4470_s13  ;;  %p4476_p1 = scmp.lt.s32.totalorder %s4470_s13, %s4470_s13 }
  0x3e   :  { %p4477_p2 = por %p4476_p1, %p4475_p0 }
  0x40   :  { %p4478_p3 = pnand %p4477_p2, %p4471_p13 }
  0x42   :  { %4481 = shalt.err (!%p4478_p3)
}
  0x43   :  { %s4540_s0 = smov 640   ;;  %s4541_s14 = smov 40  }
  0x44   :  { %45 = dma.hbm_to_vmem [thread:$0]  %s4769_s2, 24320, %s4610_s22, [#allocation6], %s4540_s0, %s4540_s0, %s4541_s14  }
  0x45   :  { %s4542_s16 = smov [#allocation10]   ;;  %s4482_s20 = scalar_lea.hbm %s4771_s4, 3072 }
  0x46   :  { %s63_s17 = sshll.u32 %s4542_s16, 4  ;;  %p4483_p4 = scmp.ne.s32.totalorder %s4771_s4, %s4482_s20  ;;  %s64_s17 = int_to_ptr.vmem [resolvable:$true] %s63_s17 }
  0x47   :  { %p4486_p5 = scmp.lt.u32.totalorder %s4482_s20, %s4771_s4 }
  0x49   :  { %p4488_p6 = pnand %p4486_p5, %p4483_p4 }
  0x4b   :  { %4491 = shalt.err (!%p4488_p6)
}
  0x4c   :  { %s4492_s27 = scalar_lea.vmem %s64_s17, 3072  ;;  %p4497_p8 = scmp.lt.s32.totalorder %s64_s17, %s64_s17 }
  0x4d   :  { %p4493_p7 = scmp.ne.s32.totalorder %s64_s17, %s4492_s27  ;;  %p4498_p9 = scmp.lt.s32.totalorder %s4492_s27, %s4492_s27 }
  0x4f   :  { %p4499_p10 = por %p4498_p9, %p4497_p8 }
  0x51   :  { %p4500_p11 = pnand %p4499_p10, %p4493_p7 }
  0x53   :  { %4503 = shalt.err (!%p4500_p11)
}
  0x54   :  { %s4543_s2 = smov 64   ;;  %s4544_s22 = smov 4  }
  0x55   :  { %69 = dma.hbm_to_vmem [thread:$0]  %s4771_s4, 3072, %s64_s17, [#allocation9], %s4543_s2, %s4543_s2, %s4544_s22  }
  0x56   :  { %4526 = dma.done.wait [#allocation3], 192  }
  0x57   :  { %4527 = vsyncadd [#allocation3], 4294967104 }
  0x58   :  { %4528 = dma.done.wait [#allocation6], 24480  }
  0x59   :  { %4529 = vsyncadd [#allocation6], 4294942816 }
  0x5a   :  { %4530 = dma.done.wait [#allocation9], 21504  }
  0x5b   :  { %4531 = vsyncadd [#allocation9], 4294945792  ;;  %v4545_v0 = vmov 0   ;;  %v3849_v1 = vld [vmem:[#allocation7 + $0x4] ss:$40 sps:$4 sm:$0xff]   ;;  %vm1293_vm0 = vcmask 392192  }
  0x5c   :  { %1370 = vmatprep.mubr.bf16.mxu1 %v4545_v0  ;;  %v3851_v2 = vld [vmem:[#allocation7 + $0x504] ss:$40 sps:$4 sm:$0xff]   ;;  %1297 = vmatprep.subr.bf16.mxu0 %v3849_v1  ;;  %v3853_v3 = vld [vmem:[#allocation7] ss:$40 sps:$4 sm:$0xff]   ;;  %v3855_v5 = vld [vmem:[#allocation7 + $0x54] ss:$40 sps:$4 sm:$0xff]  }
  0x5d   :  { %v3854_v4 = vld [vmem:[#allocation7 + $0x500] ss:$40 sps:$4 sm:$0xff]   ;;  %1338 = vmatprep.subr.bf16.mxu1 %v3851_v2  ;;  %1298 = vmatpush1.bf16.msra.mxu0 %v3853_v3  ;;  %v3857_v6 = vld [vmem:[#allocation7 + $0x554] ss:$40 sps:$4 sm:$0xff]   ;;  %v3859_v7 = vld [vmem:[#allocation7 + $0x50] ss:$40 sps:$4 sm:$0xff]  }
  0x5e   :  { %1339 = vmatpush1.bf16.msra.mxu1 %v3854_v4  ;;  %1299 = vmatprep.subr.bf16.mxu0 %v3855_v5  ;;  %v3860_v8 = vld [vmem:[#allocation7 + $0x550] ss:$40 sps:$4 sm:$0xff]   ;;  %v3861_v9 = vld [vmem:[#allocation7 + $0xa4] ss:$40 sps:$4 sm:$0xff]   ;;  %v3865_v11 = vld [vmem:[#allocation7 + $0xa0] ss:$40 sps:$4 sm:$0xff]  }
  0x5f   :  { %1340 = vmatprep.subr.bf16.mxu1 %v3857_v6  ;;  %v3863_v10 = vld [vmem:[#allocation7 + $0x5a4] ss:$40 sps:$4 sm:$0xff]   ;;  %v3866_v12 = vld [vmem:[#allocation7 + $0x5a0] ss:$40 sps:$4 sm:$0xff]   ;;  %v3867_v13 = vld [vmem:[#allocation7 + $0xf4] ss:$40 sps:$4 sm:$0xff]  }
  0x60   :  { %v3869_v14 = vld [vmem:[#allocation7 + $0x8] ss:$40 sps:$4 sm:$0xff]   ;;  %v3871_v15 = vld [vmem:[#allocation7 + $0xc] ss:$40 sps:$4 sm:$0xff]   ;;  %v3878_v19 = vld [vmem:[#allocation7 + $0x5c] ss:$40 sps:$4 sm:$0xff]  }
  0x61   :  { %1300 = vmatpush1.bf16.msra.mxu0 %v3859_v7  ;;  %v4654_v16 = vld [vmem:[#allocation2 + $0x8] ss:$0 sps:$4 sm:$0xff]   ;;  %v3874_v18 = vld [vmem:[#allocation7 + $0x144] ss:$40 sps:$4 sm:$0xff]   ;;  %v3876_v20 = vld [vmem:[#allocation7 + $0x58] ss:$40 sps:$4 sm:$0xff]  }
  0x62   :  { %1341 = vmatpush1.bf16.msra.mxu1 %v3860_v8  ;;  %1301 = vmatprep.subr.bf16.mxu0 %v3861_v9  ;;  %v3872_v17 = vld [vmem:[#allocation7 + $0xf0] ss:$40 sps:$4 sm:$0xff]   ;;  %v3879_v21 = vld [vmem:[#allocation7 + $0x140] ss:$40 sps:$4 sm:$0xff]   ;;  %v3880_v22 = vld [vmem:[#allocation7 + $0x194] ss:$40 sps:$4 sm:$0xff]  }
  0x63   :  { %1342 = vmatprep.subr.bf16.mxu1 %v3863_v10  ;;  %v3884_v23 = vld [vmem:[#allocation7 + $0xac] ss:$40 sps:$4 sm:$0xff]   ;;  %v3882_v24 = vld [vmem:[#allocation7 + $0xa8] ss:$40 sps:$4 sm:$0xff]   ;;  %v3890_v27 = vld [vmem:[#allocation7 + $0xfc] ss:$40 sps:$4 sm:$0xff]  }
  0x64   :  { %v3885_v25 = vld [vmem:[#allocation7 + $0x190] ss:$40 sps:$4 sm:$0xff]   ;;  %v3886_v26 = vld [vmem:[#allocation7 + $0x1e4] ss:$40 sps:$4 sm:$0xff]   ;;  %v3891_v29 = vld [vmem:[#allocation7 + $0x1e0] ss:$40 sps:$4 sm:$0xff]  }
  0x65   :  { %1302 = vmatpush1.bf16.msra.mxu0 %v3865_v11  ;;  %v3888_v28 = vld [vmem:[#allocation7 + $0xf8] ss:$40 sps:$4 sm:$0xff]   ;;  %v3892_v30 = vld [vmem:[#allocation7 + $0x234] ss:$40 sps:$4 sm:$0xff]   ;;  %v3894_v32 = vld [vmem:[#allocation7 + $0x148] ss:$40 sps:$4 sm:$0xff]  }
  0x66   :  { %1343 = vmatpush1.bf16.msra.mxu1 %v3866_v12  ;;  %1303 = vmatprep.subr.bf16.mxu0 %v3867_v13  ;;  %v3896_v31 = vld [vmem:[#allocation7 + $0x14c] ss:$40 sps:$4 sm:$0xff]   ;;  %v3897_v33 = vld [vmem:[#allocation7 + $0x230] ss:$40 sps:$4 sm:$0xff]   ;;  %v3902_v35 = vld [vmem:[#allocation7 + $0x19c] ss:$40 sps:$4 sm:$0xff]  }
  0x67   :  { %1379 = vmatprep.subr.bf16.mxu1 %v3871_v15  ;;  %v3898_v34 = vld [vmem:[#allocation7 + $0x284] ss:$40 sps:$4 sm:$0xff]   ;;  %v3900_v36 = vld [vmem:[#allocation7 + $0x198] ss:$40 sps:$4 sm:$0xff]   ;;  %v3904_v38 = vld [vmem:[#allocation7 + $0x2d4] ss:$40 sps:$4 sm:$0xff]  }
  0x68   :  { %v3903_v37 = vld [vmem:[#allocation7 + $0x280] ss:$40 sps:$4 sm:$0xff]   ;;  %v3908_v39 = vld [vmem:[#allocation7 + $0x1ec] ss:$40 sps:$4 sm:$0xff]   ;;  %v3909_v41 = vld [vmem:[#allocation7 + $0x2d0] ss:$40 sps:$4 sm:$0xff]  }
  0x69   :  { %3510 = vmatmul.mubr.msk.bf16.vlgmr.msra.gmra.mrb[0].mxu1 %vm1293_vm0, %v4654_v16  ;;  %1304 = vmatpush1.bf16.msra.mxu0 %v3872_v17  ;;  %v3906_v40 = vld [vmem:[#allocation7 + $0x1e8] ss:$40 sps:$4 sm:$0xff]   ;;  %v3910_v42 = vld [vmem:[#allocation7 + $0x324] ss:$40 sps:$4 sm:$0xff]   ;;  %v3912_v44 = vld [vmem:[#allocation7 + $0x238] ss:$40 sps:$4 sm:$0xff]  }
  0x6a   :  { %1380 = vmatpush1.bf16.msra.mxu1 %v3869_v14  ;;  %1305 = vmatprep.subr.bf16.mxu0 %v3874_v18  ;;  %v3914_v43 = vld [vmem:[#allocation7 + $0x23c] ss:$40 sps:$4 sm:$0xff]   ;;  %v3915_v45 = vld [vmem:[#allocation7 + $0x320] ss:$40 sps:$4 sm:$0xff]   ;;  %v3920_v47 = vld [vmem:[#allocation7 + $0x28c] ss:$40 sps:$4 sm:$0xff]  }
  0x6b   :  { %1381 = vmatprep.subr.bf16.mxu1 %v3878_v19  ;;  %v3916_v46 = vld [vmem:[#allocation7 + $0x374] ss:$40 sps:$4 sm:$0xff]   ;;  %v3918_v48 = vld [vmem:[#allocation7 + $0x288] ss:$40 sps:$4 sm:$0xff]   ;;  %v3922_v51 = vld [vmem:[#allocation7 + $0x3c4] ss:$40 sps:$4 sm:$0xff]  }
  0x6c   :  { %v87_v49 = vld [vmem:[#allocation2] sm:$0xff]  ;;  %v3926_v53 = vld [vmem:[#allocation7 + $0x2dc] ss:$40 sps:$4 sm:$0xff]   ;;  %v3924_v54 = vld [vmem:[#allocation7 + $0x2d8] ss:$40 sps:$4 sm:$0xff]   ;;  %vm4547_vm1 = vmmov 0  }
  0x6d   :  { %1306 = vmatpush1.bf16.msra.mxu0 %v3879_v21  ;;  %v3921_v50 = vld [vmem:[#allocation7 + $0x370] ss:$40 sps:$4 sm:$0xff]   ;;  %v4658_v52 = vcombine.high %v87_v49, %v87_v49  ;;  %v3927_v55 = vld [vmem:[#allocation7 + $0x3c0] ss:$40 sps:$4 sm:$0xff]   ;;  %v3928_v56 = vld [vmem:[#allocation7 + $0x414] ss:$40 sps:$4 sm:$0xff]   ;;  %v4662_v7 = vcombine.low %v87_v49, %v87_v49 }
  0x6e   :  { %1382 = vmatpush1.bf16.msra.mxu1 %v3876_v20  ;;  %1307 = vmatprep.subr.bf16.mxu0 %v3880_v22  ;;  %v3932_v57 = vld [vmem:[#allocation7 + $0x32c] ss:$40 sps:$4 sm:$0xff]   ;;  %v3930_v58 = vld [vmem:[#allocation7 + $0x328] ss:$40 sps:$4 sm:$0xff]   ;;  %v3938_v61 = vld [vmem:[#allocation7 + $0x37c] ss:$40 sps:$4 sm:$0xff]  }
  0x6f   :  { %1383 = vmatprep.subr.bf16.mxu1 %v3884_v23  ;;  %1329 = vmatprep.mubr.bf16.mxu0 %v4658_v52  ;;  %v3933_v59 = vld [vmem:[#allocation7 + $0x410] ss:$40 sps:$4 sm:$0xff]   ;;  %v3934_v60 = vld [vmem:[#allocation7 + $0x464] ss:$40 sps:$4 sm:$0xff]   ;;  %v3939_v63 = vld [vmem:[#allocation7 + $0x460] ss:$40 sps:$4 sm:$0xff]  }
  0x70   :  { %1411 = vmatprep.mubr.bf16.mxu1 %v4658_v52  ;;  %v3936_v62 = vld [vmem:[#allocation7 + $0x378] ss:$40 sps:$4 sm:$0xff]   ;;  %v3940_v1 = vld [vmem:[#allocation7 + $0x4b4] ss:$40 sps:$4 sm:$0xff]   ;;  %v3942_v3 = vld [vmem:[#allocation7 + $0x3c8] ss:$40 sps:$4 sm:$0xff]  }
  0x71   :  { %1308 = vmatpush1.bf16.msra.mxu0 %v3885_v25  ;;  %v3944_v2 = vld [vmem:[#allocation7 + $0x3cc] ss:$40 sps:$4 sm:$0xff]   ;;  %v3945_v4 = vld [vmem:[#allocation7 + $0x4b0] ss:$40 sps:$4 sm:$0xff]   ;;  %v3950_v5 = vld [vmem:[#allocation7 + $0x41c] ss:$40 sps:$4 sm:$0xff]  }
  0x72   :  { %1384 = vmatpush1.bf16.msra.mxu1 %v3882_v24  ;;  %1309 = vmatprep.subr.bf16.mxu0 %v3886_v26  ;;  %v3953_v6 = vld [vmem:[#allocation7 + $0x14] ss:$40 sps:$4 sm:$0xff]   ;;  %v3948_v8 = vld [vmem:[#allocation7 + $0x418] ss:$40 sps:$4 sm:$0xff]   ;;  %v3959_v11 = vld [vmem:[#allocation7 + $0x64] ss:$40 sps:$4 sm:$0xff]  }
  0x73   :  { %1385 = vmatprep.subr.bf16.mxu1 %v3890_v27  ;;  %v3951_v9 = vld [vmem:[#allocation7 + $0x10] ss:$40 sps:$4 sm:$0xff]   ;;  %v3956_v10 = vld [vmem:[#allocation7 + $0x46c] ss:$40 sps:$4 sm:$0xff]   ;;  %v3957_v13 = vld [vmem:[#allocation7 + $0x60] ss:$40 sps:$4 sm:$0xff]  }
  0x74   :  { %v3954_v12 = vld [vmem:[#allocation7 + $0x468] ss:$40 sps:$4 sm:$0xff]   ;;  %v3962_v14 = vld [vmem:[#allocation7 + $0x4bc] ss:$40 sps:$4 sm:$0xff]   ;;  %v3960_v17 = vld [vmem:[#allocation7 + $0x4b8] ss:$40 sps:$4 sm:$0xff]  }
  0x75   :  { %1310 = vmatpush1.bf16.msra.mxu0 %v3891_v29  ;;  %v3965_v15 = vld [vmem:[#allocation7 + $0xb4] ss:$40 sps:$4 sm:$0xff]   ;;  %v3963_v18 = vld [vmem:[#allocation7 + $0xb0] ss:$40 sps:$4 sm:$0xff]   ;;  %v3971_v20 = vld [vmem:[#allocation7 + $0x104] ss:$40 sps:$4 sm:$0xff]  }
  0x76   :  { %1386 = vmatpush1.bf16.msra.mxu1 %v3888_v28  ;;  %1311 = vmatprep.subr.bf16.mxu0 %v3892_v30  ;;  %v3968_v19 = vld [vmem:[#allocation7 + $0x50c] ss:$40 sps:$4 sm:$0xff]   ;;  %v3966_v21 = vld [vmem:[#allocation7 + $0x508] ss:$40 sps:$4 sm:$0xff]   ;;  %v3974_v23 = vld [vmem:[#allocation7 + $0x55c] ss:$40 sps:$4 sm:$0xff]  }
  0x77   :  { %1387 = vmatprep.subr.bf16.mxu1 %v3896_v31  ;;  %v3969_v22 = vld [vmem:[#allocation7 + $0x100] ss:$40 sps:$4 sm:$0xff]   ;;  %v3977_v24 = vld [vmem:[#allocation7 + $0x154] ss:$40 sps:$4 sm:$0xff]   ;;  %v3975_v26 = vld [vmem:[#allocation7 + $0x150] ss:$40 sps:$4 sm:$0xff]  }
  0x78   :  { %v3972_v25 = vld [vmem:[#allocation7 + $0x558] ss:$40 sps:$4 sm:$0xff]   ;;  %v3980_v27 = vld [vmem:[#allocation7 + $0x5ac] ss:$40 sps:$4 sm:$0xff]   ;;  %v3978_v29 = vld [vmem:[#allocation7 + $0x5a8] ss:$40 sps:$4 sm:$0xff]  }
  0x79   :  { %1312 = vmatpush1.bf16.msra.mxu0 %v3897_v33  ;;  %v3983_v28 = vld [vmem:[#allocation7 + $0x1a4] ss:$40 sps:$4 sm:$0xff]   ;;  %v3981_v30 = vld [vmem:[#allocation7 + $0x1a0] ss:$40 sps:$4 sm:$0xff]   ;;  %v3986_v31 = vld [vmem:[#allocation7 + $0x1f4] ss:$40 sps:$4 sm:$0xff]  }
  0x7a   :  { %1388 = vmatpush1.bf16.msra.mxu1 %v3894_v32  ;;  %1313 = vmatprep.subr.bf16.mxu0 %v3898_v34  ;;  %v4025_v32 = vld [vmem:[#allocation7 + $0x1c] ss:$40 sps:$4 sm:$0xff]   ;;  %v3984_v33 = vld [vmem:[#allocation7 + $0x1f0] ss:$40 sps:$4 sm:$0xff]   ;;  %s4548_s4 = smov [#allocation11]  }
  0x7b   :  { %1389 = vmatprep.subr.bf16.mxu1 %v3902_v35  ;;  %v3989_v34 = vld [vmem:[#allocation7 + $0x244] ss:$40 sps:$4 sm:$0xff]   ;;  %v4023_v35 = vld [vmem:[#allocation7 + $0x18] ss:$40 sps:$4 sm:$0xff]   ;;  %s3306_s3 = sshll.u32 %s4548_s4, 4  ;;  %s3307_s3 = int_to_ptr.vmem [resolvable:$true] %s3306_s3 }
  0x7c   :  { %v3996_v49 = vld [vmem:[#allocation7 + $0x330] ss:$40 sps:$4 sm:$0xff]   ;;  %s4504_s21 = scalar_lea.vmem %s3307_s3, 128  ;;  %p4509_p13 = scmp.lt.s32.totalorder %s3307_s3, %s3307_s3 }
  0x7d   :  { %1314 = vmatpush1.bf16.msra.mxu0 %v3903_v37  ;;  %v3987_v37 = vld [vmem:[#allocation7 + $0x240] ss:$40 sps:$4 sm:$0xff]   ;;  %p4505_p12 = scmp.ne.s32.totalorder %s3307_s3, %s4504_s21  ;;  %p4510_p0 = scmp.lt.s32.totalorder %s4504_s21, %s4504_s21 }
  0x7e   :  { %1390 = vmatpush1.bf16.msra.mxu1 %v3900_v36  ;;  %1315 = vmatprep.subr.bf16.mxu0 %v3904_v38  ;;  %v4028_v36 = vld [vmem:[#allocation7 + $0x6c] ss:$40 sps:$4 sm:$0xff]  }
  0x7f   :  { %1391 = vmatprep.subr.bf16.mxu1 %v3908_v39  ;;  %v3992_v38 = vld [vmem:[#allocation7 + $0x294] ss:$40 sps:$4 sm:$0xff]   ;;  %v4026_v39 = vld [vmem:[#allocation7 + $0x68] ss:$40 sps:$4 sm:$0xff]   ;;  %p4511_p1 = por %p4510_p0, %p4509_p13 }
  0x81   :  { %1316 = vmatpush1.bf16.msra.mxu0 %v3909_v41  ;;  %v3990_v41 = vld [vmem:[#allocation7 + $0x290] ss:$40 sps:$4 sm:$0xff]   ;;  %p4512_p2 = pnand %p4511_p1, %p4505_p12 }
  0x82   :  { %1392 = vmatpush1.bf16.msra.mxu1 %v3906_v40  ;;  %1317 = vmatprep.subr.bf16.mxu0 %v3910_v42  ;;  %v4031_v40 = vld [vmem:[#allocation7 + $0xbc] ss:$40 sps:$4 sm:$0xff]  }
  0x83   :  { %1393 = vmatprep.subr.bf16.mxu1 %v3914_v43  ;;  %v3995_v42 = vld [vmem:[#allocation7 + $0x2e4] ss:$40 sps:$4 sm:$0xff]   ;;  %v4029_v43 = vld [vmem:[#allocation7 + $0xb8] ss:$40 sps:$4 sm:$0xff]  }
  0x85   :  { %1318 = vmatpush1.bf16.msra.mxu0 %v3915_v45  ;;  %v3993_v45 = vld [vmem:[#allocation7 + $0x2e0] ss:$40 sps:$4 sm:$0xff]  }
  0x86   :  { %1394 = vmatpush1.bf16.msra.mxu1 %v3912_v44  ;;  %1319 = vmatprep.subr.bf16.mxu0 %v3916_v46  ;;  %v4034_v44 = vld [vmem:[#allocation7 + $0x10c] ss:$40 sps:$4 sm:$0xff]  }
  0x87   :  { %1395 = vmatprep.subr.bf16.mxu1 %v3920_v47  ;;  %v3998_v46 = vld [vmem:[#allocation7 + $0x334] ss:$40 sps:$4 sm:$0xff]   ;;  %v4032_v47 = vld [vmem:[#allocation7 + $0x108] ss:$40 sps:$4 sm:$0xff]  }
  0x89   :  { %1320 = vmatpush1.bf16.msra.mxu0 %v3921_v50  ;;  %v4001_v50 = vld [vmem:[#allocation7 + $0x384] ss:$40 sps:$4 sm:$0xff]  }
  0x8a   :  { %1396 = vmatpush1.bf16.msra.mxu1 %v3918_v48  ;;  %1321 = vmatprep.subr.bf16.mxu0 %v3922_v51  ;;  %v4037_v48 = vld [vmem:[#allocation7 + $0x15c] ss:$40 sps:$4 sm:$0xff]   ;;  %v4035_v51 = vld [vmem:[#allocation7 + $0x158] ss:$40 sps:$4 sm:$0xff]  }
  0x8b   :  { %1397 = vmatprep.subr.bf16.mxu1 %v3926_v53  ;;  %v4040_v53 = vld [vmem:[#allocation7 + $0x1ac] ss:$40 sps:$4 sm:$0xff]  }
  0x8d   :  { %1322 = vmatpush1.bf16.msra.mxu0 %v3927_v55  ;;  %v4004_v55 = vld [vmem:[#allocation7 + $0x3d4] ss:$40 sps:$4 sm:$0xff]  }
  0x8e   :  { %1398 = vmatpush1.bf16.msra.mxu1 %v3924_v54  ;;  %1323 = vmatprep.subr.bf16.mxu0 %v3928_v56  ;;  %v3999_v54 = vld [vmem:[#allocation7 + $0x380] ss:$40 sps:$4 sm:$0xff]  }
  0x8f   :  { %1399 = vmatprep.subr.bf16.mxu1 %v3932_v57  ;;  %v4038_v56 = vld [vmem:[#allocation7 + $0x1a8] ss:$40 sps:$4 sm:$0xff]   ;;  %v4043_v57 = vld [vmem:[#allocation7 + $0x1fc] ss:$40 sps:$4 sm:$0xff]  }
  0x91   :  { %1324 = vmatpush1.bf16.msra.mxu0 %v3933_v59  ;;  %v4007_v59 = vld [vmem:[#allocation7 + $0x424] ss:$40 sps:$4 sm:$0xff]  }
  0x92   :  { %1400 = vmatpush1.bf16.msra.mxu1 %v3930_v58  ;;  %1325 = vmatprep.subr.bf16.mxu0 %v3934_v60  ;;  %v4002_v58 = vld [vmem:[#allocation7 + $0x3d0] ss:$40 sps:$4 sm:$0xff]  }
  0x93   :  { %1401 = vmatprep.subr.bf16.mxu1 %v3938_v61  ;;  %v4041_v60 = vld [vmem:[#allocation7 + $0x1f8] ss:$40 sps:$4 sm:$0xff]   ;;  %v4049_v61 = vld [vmem:[#allocation7 + $0x24c] ss:$40 sps:$4 sm:$0xff]  }
  0x95   :  { %1326 = vmatpush1.bf16.msra.mxu0 %v3939_v63  ;;  %v4010_v63 = vld [vmem:[#allocation7 + $0x474] ss:$40 sps:$4 sm:$0xff]  }
  0x96   :  { %1402 = vmatpush1.bf16.msra.mxu1 %v3936_v62  ;;  %1327 = vmatprep.subr.bf16.mxu0 %v3940_v1  ;;  %v4005_v62 = vld [vmem:[#allocation7 + $0x420] ss:$40 sps:$4 sm:$0xff]  }
  0x97   :  { %1403 = vmatprep.subr.bf16.mxu1 %v3944_v2  ;;  %v4047_v1 = vld [vmem:[#allocation7 + $0x248] ss:$40 sps:$4 sm:$0xff]   ;;  %v4055_v2 = vld [vmem:[#allocation7 + $0x29c] ss:$40 sps:$4 sm:$0xff]  }
  0x99   :  { %1328 = vmatpush1.bf16.msra.mxu0 %v3945_v4  ;;  %v4013_v4 = vld [vmem:[#allocation7 + $0x4c4] ss:$40 sps:$4 sm:$0xff]  }
  0x9a   :  { %1404 = vmatpush1.bf16.msra.mxu1 %v3942_v3  ;;  %1461 = vmatprep.subr.bf16.mxu0 %v3953_v6  ;;  %v4008_v3 = vld [vmem:[#allocation7 + $0x470] ss:$40 sps:$4 sm:$0xff]   ;;  %v4061_v6 = vld [vmem:[#allocation7 + $0x2ec] ss:$40 sps:$4 sm:$0xff]  }
  0x9b   :  { %1405 = vmatprep.subr.bf16.mxu1 %v3950_v5  ;;  %v4053_v5 = vld [vmem:[#allocation7 + $0x298] ss:$40 sps:$4 sm:$0xff]  }
  0x9c   :  { %1330 = vmatmul.mubr.bf16.vlgmr.msra.gmra.mrb[0].mxu0 %v4662_v7 }
  0x9d   :  { %1462 = vmatpush1.bf16.msra.mxu0 %v3951_v9  ;;  %1493 = vmatprep.mubr.bf16.mxu0 %v4658_v52  ;;  %v4016_v9 = vld [vmem:[#allocation7 + $0x514] ss:$40 sps:$4 sm:$0xff]  }
  0x9e   :  { %1406 = vmatpush1.bf16.msra.mxu1 %v3948_v8  ;;  %1463 = vmatprep.subr.bf16.mxu0 %v3959_v11  ;;  %v4011_v8 = vld [vmem:[#allocation7 + $0x4c0] ss:$40 sps:$4 sm:$0xff]   ;;  %v4067_v11 = vld [vmem:[#allocation7 + $0x33c] ss:$40 sps:$4 sm:$0xff]  }
  0x9f   :  { %1407 = vmatprep.subr.bf16.mxu1 %v3956_v10  ;;  %v4059_v10 = vld [vmem:[#allocation7 + $0x2e8] ss:$40 sps:$4 sm:$0xff]  }
  0xa1   :  { %1464 = vmatpush1.bf16.msra.mxu0 %v3957_v13  ;;  %v4019_v13 = vld [vmem:[#allocation7 + $0x564] ss:$40 sps:$4 sm:$0xff]  }
  0xa2   :  { %1408 = vmatpush1.bf16.msra.mxu1 %v3954_v12  ;;  %1465 = vmatprep.subr.bf16.mxu0 %v3965_v15  ;;  %v4014_v12 = vld [vmem:[#allocation7 + $0x510] ss:$40 sps:$4 sm:$0xff]   ;;  %v4073_v15 = vld [vmem:[#allocation7 + $0x38c] ss:$40 sps:$4 sm:$0xff]  }
  0xa3   :  { %1409 = vmatprep.subr.bf16.mxu1 %v3962_v14  ;;  %v4065_v14 = vld [vmem:[#allocation7 + $0x338] ss:$40 sps:$4 sm:$0xff]  }
  0xa5   :  { %1466 = vmatpush1.bf16.msra.mxu0 %v3963_v18  ;;  %v4022_v18 = vld [vmem:[#allocation7 + $0x5b4] ss:$40 sps:$4 sm:$0xff]  }
  0xa6   :  { %1410 = vmatpush1.bf16.msra.mxu1 %v3960_v17  ;;  %1467 = vmatprep.subr.bf16.mxu0 %v3971_v20  ;;  %v4017_v17 = vld [vmem:[#allocation7 + $0x560] ss:$40 sps:$4 sm:$0xff]   ;;  %v4020_v20 = vld [vmem:[#allocation7 + $0x5b0] ss:$40 sps:$4 sm:$0xff]  }
  0xa7   :  { %1420 = vmatprep.subr.bf16.mxu1 %v3968_v19  ;;  %v4071_v19 = vld [vmem:[#allocation7 + $0x388] ss:$40 sps:$4 sm:$0xff]  }
  0xa9   :  { %1412 = vmatmul.mubr.bf16.vlgmr.msra.gmra.mrb[4].mxu1 %v4662_v7  ;;  %1468 = vmatpush1.bf16.msra.mxu0 %v3969_v22  ;;  %v4046_v22 = vld [vmem:[#allocation7 + $0x24] ss:$40 sps:$4 sm:$0xff]  }
  0xaa   :  { %1421 = vmatpush1.bf16.msra.mxu1 %v3966_v21  ;;  %1469 = vmatprep.subr.bf16.mxu0 %v3977_v24  ;;  %v4079_v21 = vld [vmem:[#allocation7 + $0x3dc] ss:$40 sps:$4 sm:$0xff]   ;;  %v4085_v24 = vld [vmem:[#allocation7 + $0x42c] ss:$40 sps:$4 sm:$0xff]  }
  0xab   :  { %1422 = vmatprep.subr.bf16.mxu1 %v3974_v23  ;;  %1452 = vmatprep.mubr.bf16.mxu1 %v4545_v0  ;;  %v4077_v23 = vld [vmem:[#allocation7 + $0x3d8] ss:$40 sps:$4 sm:$0xff]  }
  0xad   :  { %1470 = vmatpush1.bf16.msra.mxu0 %v3975_v26  ;;  %v4052_v26 = vld [vmem:[#allocation7 + $0x74] ss:$40 sps:$4 sm:$0xff]  }
  0xae   :  { %1423 = vmatpush1.bf16.msra.mxu1 %v3972_v25  ;;  %1471 = vmatprep.subr.bf16.mxu0 %v3983_v28  ;;  %v4044_v25 = vld [vmem:[#allocation7 + $0x20] ss:$40 sps:$4 sm:$0xff]   ;;  %v4091_v28 = vld [vmem:[#allocation7 + $0x47c] ss:$40 sps:$4 sm:$0xff]  }
  0xaf   :  { %1424 = vmatprep.subr.bf16.mxu1 %v3980_v27  ;;  %v4083_v27 = vld [vmem:[#allocation7 + $0x428] ss:$40 sps:$4 sm:$0xff]  }
  0xb1   :  { %1472 = vmatpush1.bf16.msra.mxu0 %v3981_v30  ;;  %v4058_v30 = vld [vmem:[#allocation7 + $0xc4] ss:$40 sps:$4 sm:$0xff]  }
  0xb2   :  { %1425 = vmatpush1.bf16.msra.mxu1 %v3978_v29  ;;  %1473 = vmatprep.subr.bf16.mxu0 %v3986_v31  ;;  %v4050_v29 = vld [vmem:[#allocation7 + $0x70] ss:$40 sps:$4 sm:$0xff]  }
  0xb3   :  { %1543 = vmatprep.subr.bf16.mxu1 %v4025_v32  ;;  %v4089_v31 = vld [vmem:[#allocation7 + $0x478] ss:$40 sps:$4 sm:$0xff]   ;;  %v4097_v32 = vld [vmem:[#allocation7 + $0x4cc] ss:$40 sps:$4 sm:$0xff]  }
  0xb5   :  { %3511 = vmatmul.mubr.msk.bf16.vlgmr.msra.gmra.mrb[4].mxu1 %vm1293_vm0, %v4654_v16  ;;  %1474 = vmatpush1.bf16.msra.mxu0 %v3984_v33  ;;  %v4056_v33 = vld [vmem:[#allocation7 + $0xc0] ss:$40 sps:$4 sm:$0xff]  }
  0xb6   :  { %1544 = vmatpush1.bf16.msra.mxu1 %v4023_v35  ;;  %1475 = vmatprep.subr.bf16.mxu0 %v3989_v34  ;;  %v4064_v34 = vld [vmem:[#allocation7 + $0x114] ss:$40 sps:$4 sm:$0xff]   ;;  %v4095_v35 = vld [vmem:[#allocation7 + $0x4c8] ss:$40 sps:$4 sm:$0xff]  }
  0xb7   :  { %1545 = vmatprep.subr.bf16.mxu1 %v4028_v36  ;;  %1575 = vmatprep.mubr.bf16.mxu1 %v4658_v52  ;;  %v4103_v36 = vld [vmem:[#allocation7 + $0x51c] ss:$40 sps:$4 sm:$0xff]  }
  0xb9   :  { %1476 = vmatpush1.bf16.msra.mxu0 %v3987_v37  ;;  %v4062_v37 = vld [vmem:[#allocation7 + $0x110] ss:$40 sps:$4 sm:$0xff]  }
  0xba   :  { %1546 = vmatpush1.bf16.msra.mxu1 %v4026_v39  ;;  %1477 = vmatprep.subr.bf16.mxu0 %v3992_v38  ;;  %v4070_v38 = vld [vmem:[#allocation7 + $0x164] ss:$40 sps:$4 sm:$0xff]  }
  0xbb   :  { %1547 = vmatprep.subr.bf16.mxu1 %v4031_v40  ;;  %v4109_v39 = vld [vmem:[#allocation7 + $0x56c] ss:$40 sps:$4 sm:$0xff]   ;;  %v4068_v40 = vld [vmem:[#allocation7 + $0x160] ss:$40 sps:$4 sm:$0xff]  }
  0xbd   :  { %1478 = vmatpush1.bf16.msra.mxu0 %v3990_v41  ;;  %v4107_v41 = vld [vmem:[#allocation7 + $0x568] ss:$40 sps:$4 sm:$0xff]  }
  0xbe   :  { %1548 = vmatpush1.bf16.msra.mxu1 %v4029_v43  ;;  %1479 = vmatprep.subr.bf16.mxu0 %v3995_v42  ;;  %v4115_v42 = vld [vmem:[#allocation7 + $0x5bc] ss:$40 sps:$4 sm:$0xff]   ;;  %v4074_v43 = vld [vmem:[#allocation7 + $0x1b0] ss:$40 sps:$4 sm:$0xff]  }
  0xbf   :  { %1549 = vmatprep.subr.bf16.mxu1 %v4034_v44  ;;  %v4082_v44 = vld [vmem:[#allocation7 + $0x204] ss:$40 sps:$4 sm:$0xff]  }
  0xc1   :  { %1480 = vmatpush1.bf16.msra.mxu0 %v3993_v45  ;;  %v4113_v45 = vld [vmem:[#allocation7 + $0x5b8] ss:$40 sps:$4 sm:$0xff]  }
  0xc2   :  { %1550 = vmatpush1.bf16.msra.mxu1 %v4032_v47  ;;  %1481 = vmatprep.subr.bf16.mxu0 %v3998_v46  ;;  %v4124_v46 = vld [vmem:[#allocation7 + $0x524] ss:$40 sps:$4 sm:$0xff]   ;;  %v4080_v47 = vld [vmem:[#allocation7 + $0x200] ss:$40 sps:$4 sm:$0xff]  }
  0xc3   :  { %1551 = vmatprep.subr.bf16.mxu1 %v4037_v48  ;;  %v4088_v48 = vld [vmem:[#allocation7 + $0x254] ss:$40 sps:$4 sm:$0xff]  }
  0xc5   :  { %1482 = vmatpush1.bf16.msra.mxu0 %v3996_v49  ;;  %v4122_v49 = vld [vmem:[#allocation7 + $0x520] ss:$40 sps:$4 sm:$0xff]  }
  0xc6   :  { %1552 = vmatpush1.bf16.msra.mxu1 %v4035_v51  ;;  %1483 = vmatprep.subr.bf16.mxu0 %v4001_v50  ;;  %v4130_v50 = vld [vmem:[#allocation7 + $0x574] ss:$40 sps:$4 sm:$0xff]   ;;  %v4086_v51 = vld [vmem:[#allocation7 + $0x250] ss:$40 sps:$4 sm:$0xff]  }
  0xc7   :  { %1553 = vmatprep.subr.bf16.mxu1 %v4040_v53  ;;  %v4094_v53 = vld [vmem:[#allocation7 + $0x2a4] ss:$40 sps:$4 sm:$0xff]  }
  0xc9   :  { %1484 = vmatpush1.bf16.msra.mxu0 %v3999_v54  ;;  %v4393_v54 = vld [vmem:[#allocation2 + $0x8] ss:$0 sps:$4 sm:$0xff]  }
  0xca   :  { %1554 = vmatpush1.bf16.msra.mxu1 %v4038_v56  ;;  %1485 = vmatprep.subr.bf16.mxu0 %v4004_v55  ;;  %v4128_v55 = vld [vmem:[#allocation7 + $0x570] ss:$40 sps:$4 sm:$0xff]   ;;  %v4136_v56 = vld [vmem:[#allocation7 + $0x5c4] ss:$40 sps:$4 sm:$0xff]  }
  0xcb   :  { %1555 = vmatprep.subr.bf16.mxu1 %v4043_v57  ;;  %v4092_v57 = vld [vmem:[#allocation7 + $0x2a0] ss:$40 sps:$4 sm:$0xff]  }
  0xcd   :  { %1486 = vmatpush1.bf16.msra.mxu0 %v4002_v58  ;;  %v4100_v58 = vld [vmem:[#allocation7 + $0x2f4] ss:$40 sps:$4 sm:$0xff]  }
  0xce   :  { %1556 = vmatpush1.bf16.msra.mxu1 %v4041_v60  ;;  %1487 = vmatprep.subr.bf16.mxu0 %v4007_v59  ;;  %v4134_v59 = vld [vmem:[#allocation7 + $0x5c0] ss:$40 sps:$4 sm:$0xff]  }
  0xcf   :  { %1557 = vmatprep.subr.bf16.mxu1 %v4049_v61  ;;  %v4139_v60 = vld [vmem:[#allocation8 + $0x4] ss:$12 sps:$4 sm:$0xff]   ;;  %v4098_v61 = vld [vmem:[#allocation7 + $0x2f0] ss:$40 sps:$4 sm:$0xff]  }
  0xd1   :  { %1488 = vmatpush1.bf16.msra.mxu0 %v4005_v62  ;;  %v4106_v62 = vld [vmem:[#allocation7 + $0x344] ss:$40 sps:$4 sm:$0xff]  }
  0xd2   :  { %1558 = vmatpush1.bf16.msra.mxu1 %v4047_v1  ;;  %1489 = vmatprep.subr.bf16.mxu0 %v4010_v63  ;;  %v4137_v63 = vld [vmem:[#allocation8] ss:$12 sps:$4 sm:$0xff]   ;;  %v4142_v1 = vld [vmem:[#allocation8 + $0x1c] ss:$12 sps:$4 sm:$0xff]  }
  0xd3   :  { %1559 = vmatprep.subr.bf16.mxu1 %v4055_v2  ;;  %v4104_v2 = vld [vmem:[#allocation7 + $0x340] ss:$40 sps:$4 sm:$0xff]  }
  0xd5   :  { %1490 = vmatpush1.bf16.msra.mxu0 %v4008_v3  ;;  %v4112_v3 = vld [vmem:[#allocation7 + $0x394] ss:$40 sps:$4 sm:$0xff]  }
  0xd6   :  { %1560 = vmatpush1.bf16.msra.mxu1 %v4053_v5  ;;  %1491 = vmatprep.subr.bf16.mxu0 %v4013_v4  ;;  %v4140_v4 = vld [vmem:[#allocation8 + $0x18] ss:$12 sps:$4 sm:$0xff]   ;;  %v4145_v5 = vld [vmem:[#allocation8 + $0x34] ss:$12 sps:$4 sm:$0xff]  }
  0xd7   :  { %1561 = vmatprep.subr.bf16.mxu1 %v4061_v6  ;;  %v4110_v6 = vld [vmem:[#allocation7 + $0x390] ss:$40 sps:$4 sm:$0xff]  }
  0xd9   :  { %1492 = vmatpush1.bf16.msra.mxu0 %v4011_v8  ;;  %v4118_v8 = vld [vmem:[#allocation7 + $0x3e4] ss:$40 sps:$4 sm:$0xff]  }
  0xda   :  { %1562 = vmatpush1.bf16.msra.mxu1 %v4059_v10  ;;  %1502 = vmatprep.subr.bf16.mxu0 %v4016_v9  ;;  %v4143_v9 = vld [vmem:[#allocation8 + $0x30] ss:$12 sps:$4 sm:$0xff]   ;;  %v4148_v10 = vld [vmem:[#allocation8 + $0x4c] ss:$12 sps:$4 sm:$0xff]  }
  0xdb   :  { %1563 = vmatprep.subr.bf16.mxu1 %v4067_v11  ;;  %v4116_v11 = vld [vmem:[#allocation7 + $0x3e0] ss:$40 sps:$4 sm:$0xff]  }
  0xdc   :  { %1494 = vmatmul.mubr.bf16.vlgmr.msra.gmra.mrb[4].mxu0 %v4662_v7 }
  0xdd   :  { %1503 = vmatpush1.bf16.msra.mxu0 %v4014_v12  ;;  %1534 = vmatprep.mubr.bf16.mxu0 %v4545_v0  ;;  %v4121_v12 = vld [vmem:[#allocation7 + $0x434] ss:$40 sps:$4 sm:$0xff]  }
  0xde   :  { %1504 = vmatprep.subr.bf16.mxu0 %v4019_v13  ;;  %1564 = vmatpush1.bf16.msra.mxu1 %v4065_v14  ;;  %v4146_v13 = vld [vmem:[#allocation8 + $0x48] ss:$12 sps:$4 sm:$0xff]   ;;  %v4151_v14 = vld [vmem:[#allocation8 + $0x64] ss:$12 sps:$4 sm:$0xff]  }
  0xdf   :  { %1565 = vmatprep.subr.bf16.mxu1 %v4073_v15  ;;  %v4119_v15 = vld [vmem:[#allocation7 + $0x430] ss:$40 sps:$4 sm:$0xff]  }
  0xe1   :  { %1505 = vmatpush1.bf16.msra.mxu0 %v4017_v17  ;;  %v4127_v17 = vld [vmem:[#allocation7 + $0x484] ss:$40 sps:$4 sm:$0xff]  }
  0xe2   :  { %1506 = vmatprep.subr.bf16.mxu0 %v4022_v18  ;;  %1566 = vmatpush1.bf16.msra.mxu1 %v4071_v19  ;;  %v4149_v18 = vld [vmem:[#allocation8 + $0x60] ss:$12 sps:$4 sm:$0xff]   ;;  %v4125_v19 = vld [vmem:[#allocation7 + $0x480] ss:$40 sps:$4 sm:$0xff]  }
  0xe3   :  { %1567 = vmatprep.subr.bf16.mxu1 %v4079_v21  ;;  %v4133_v21 = vld [vmem:[#allocation7 + $0x4d4] ss:$40 sps:$4 sm:$0xff]  }
  0xe5   :  { %1507 = vmatpush1.bf16.msra.mxu0 %v4020_v20  ;;  %v4154_v20 = vld [vmem:[#allocation8 + $0x7c] ss:$12 sps:$4 sm:$0xff]  }
  0xe6   :  { %1625 = vmatprep.subr.bf16.mxu0 %v4046_v22  ;;  %1568 = vmatpush1.bf16.msra.mxu1 %v4077_v23  ;;  %v4152_v22 = vld [vmem:[#allocation8 + $0x78] ss:$12 sps:$4 sm:$0xff]   ;;  %v4131_v23 = vld [vmem:[#allocation7 + $0x4d0] ss:$40 sps:$4 sm:$0xff]  }
  0xe7   :  { %1569 = vmatprep.subr.bf16.mxu1 %v4085_v24  ;;  %v4157_v24 = vld [vmem:[#allocation8 + $0x94] ss:$12 sps:$4 sm:$0xff]  }
  0xe8   :  { %3512 = vmatmul.mubr.msk.bf16.vlgmr.msra.gmra.mrb[4].mxu0 %vm1293_vm0, %v4654_v16  ;;  %v4101_v16 = vld [vmem:[#allocation7 + $0x518] ss:$40 sps:$4 sm:$0xff]  }
  0xe9   :  { %1626 = vmatpush1.bf16.msra.mxu0 %v4044_v25  ;;  %1657 = vmatprep.mubr.bf16.mxu0 %v4658_v52  ;;  %v4076_v52 = vld [vmem:[#allocation7 + $0x1b4] ss:$40 sps:$4 sm:$0xff]   ;;  %v4155_v25 = vld [vmem:[#allocation8 + $0x90] ss:$12 sps:$4 sm:$0xff]  }
  0xea   :  { %1627 = vmatprep.subr.bf16.mxu0 %v4052_v26  ;;  %1570 = vmatpush1.bf16.msra.mxu1 %v4083_v27  ;;  %v4164_v26 = vld [vmem:[#allocation8 + $0xc8] ss:$12 sps:$4 sm:$0xff]   ;;  %v4160_v27 = vld [vmem:[#allocation8 + $0xac] ss:$12 sps:$4 sm:$0xff]  }
  0xeb   :  { %1571 = vmatprep.subr.bf16.mxu1 %v4091_v28  ;;  %v4165_v28 = vld [vmem:[#allocation8 + $0x8] ss:$12 sps:$4 sm:$0xff]  }
  0xed   :  { %1628 = vmatpush1.bf16.msra.mxu0 %v4050_v29  ;;  %v4158_v29 = vld [vmem:[#allocation8 + $0xa8] ss:$12 sps:$4 sm:$0xff]  }
  0xee   :  { %1629 = vmatprep.subr.bf16.mxu0 %v4058_v30  ;;  %1572 = vmatpush1.bf16.msra.mxu1 %v4089_v31  ;;  %v4169_v30 = vld [vmem:[#allocation8 + $0xe0] ss:$12 sps:$4 sm:$0xff]   ;;  %v4163_v31 = vld [vmem:[#allocation8 + $0xc4] ss:$12 sps:$4 sm:$0xff]  }
  0xef   :  { %1573 = vmatprep.subr.bf16.mxu1 %v4097_v32  ;;  %v4170_v32 = vld [vmem:[#allocation8 + $0x20] ss:$12 sps:$4 sm:$0xff]  }
  0xf1   :  { %1630 = vmatpush1.bf16.msra.mxu0 %v4056_v33  ;;  %v4161_v33 = vld [vmem:[#allocation8 + $0xc0] ss:$12 sps:$4 sm:$0xff]  }
  0xf2   :  { %1631 = vmatprep.subr.bf16.mxu0 %v4064_v34  ;;  %1574 = vmatpush1.bf16.msra.mxu1 %v4095_v35  ;;  %v4174_v34 = vld [vmem:[#allocation8 + $0xf8] ss:$12 sps:$4 sm:$0xff]   ;;  %v4168_v35 = vld [vmem:[#allocation8 + $0xdc] ss:$12 sps:$4 sm:$0xff]  }
  0xf3   :  { %1584 = vmatprep.subr.bf16.mxu1 %v4103_v36  ;;  %v4175_v36 = vld [vmem:[#allocation8 + $0x38] ss:$12 sps:$4 sm:$0xff]  }
  0xf5   :  { %1632 = vmatpush1.bf16.msra.mxu0 %v4062_v37  ;;  %1576 = vmatmul.mubr.bf16.vlgmr.msra.gmra.mrb[8].mxu1 %v4662_v7  ;;  %v4166_v37 = vld [vmem:[#allocation8 + $0xd8] ss:$12 sps:$4 sm:$0xff]  }
  0xf6   :  { %1633 = vmatprep.subr.bf16.mxu0 %v4070_v38  ;;  %1585 = vmatpush1.bf16.msra.mxu1 %v4101_v16  ;;  %v4173_v38 = vld [vmem:[#allocation8 + $0xf4] ss:$12 sps:$4 sm:$0xff]   ;;  %v4179_v16 = vld [vmem:[#allocation8 + $0x110] ss:$12 sps:$4 sm:$0xff]  }
  0xf7   :  { %1586 = vmatprep.subr.bf16.mxu1 %v4109_v39  ;;  %1616 = vmatprep.mubr.bf16.mxu1 %v4545_v0  ;;  %v4180_v39 = vld [vmem:[#allocation8 + $0x50] ss:$12 sps:$4 sm:$0xff]  }
  0xf9   :  { %1634 = vmatpush1.bf16.msra.mxu0 %v4068_v40  ;;  %v4171_v40 = vld [vmem:[#allocation8 + $0xf0] ss:$12 sps:$4 sm:$0xff]  }
  0xfa   :  { %1635 = vmatprep.subr.bf16.mxu0 %v4076_v52  ;;  %1587 = vmatpush1.bf16.msra.mxu1 %v4107_v41  ;;  %v4178_v52 = vld [vmem:[#allocation8 + $0x10c] ss:$12 sps:$4 sm:$0xff]   ;;  %v4176_v41 = vld [vmem:[#allocation8 + $0x108] ss:$12 sps:$4 sm:$0xff]  }
  0xfb   :  { %1588 = vmatprep.subr.bf16.mxu1 %v4115_v42  ;;  %v4185_v42 = vld [vmem:[#allocation8 + $0x68] ss:$12 sps:$4 sm:$0xff]  }
  0xfd   :  { %1636 = vmatpush1.bf16.msra.mxu0 %v4074_v43  ;;  %v4189_v43 = vld [vmem:[#allocation8 + $0x140] ss:$12 sps:$4 sm:$0xff]  }
  0xfe   :  { %1637 = vmatprep.subr.bf16.mxu0 %v4082_v44  ;;  %1589 = vmatpush1.bf16.msra.mxu1 %v4113_v45  ;;  %v4183_v44 = vld [vmem:[#allocation8 + $0x124] ss:$12 sps:$4 sm:$0xff]   ;;  %v4181_v45 = vld [vmem:[#allocation8 + $0x120] ss:$12 sps:$4 sm:$0xff]  }
  0xff   :  { %1666 = vmatprep.subr.bf16.mxu1 %v4124_v46  ;;  %v4190_v46 = vld [vmem:[#allocation8 + $0x80] ss:$12 sps:$4 sm:$0xff]  }
 0x101   :  { %1638 = vmatpush1.bf16.msra.mxu0 %v4080_v47  ;;  %3513 = vmatmul.mubr.msk.bf16.vlgmr.msra.gmra.mrb[8].mxu1 %vm1293_vm0, %v4393_v54  ;;  %v4188_v47 = vld [vmem:[#allocation8 + $0x13c] ss:$12 sps:$4 sm:$0xff]  }
 0x102   :  { %1639 = vmatprep.subr.bf16.mxu0 %v4088_v48  ;;  %1667 = vmatpush1.bf16.msra.mxu1 %v4122_v49  ;;  %v4194_v48 = vld [vmem:[#allocation8 + $0x158] ss:$12 sps:$4 sm:$0xff]  }
 0x103   :  { %1668 = vmatprep.subr.bf16.mxu1 %v4130_v50  ;;  %1698 = vmatprep.mubr.bf16.mxu1 %v4545_v0  ;;  %v4195_v50 = vld [vmem:[#allocation8 + $0x98] ss:$12 sps:$4 sm:$0xff]  }
 0x105   :  { %1640 = vmatpush1.bf16.msra.mxu0 %v4086_v51 }
 0x106   :  { %1641 = vmatprep.subr.bf16.mxu0 %v4094_v53  ;;  %1669 = vmatpush1.bf16.msra.mxu1 %v4128_v55  ;;  %v4186_v53 = vld [vmem:[#allocation8 + $0x138] ss:$12 sps:$4 sm:$0xff]   ;;  %v4193_v55 = vld [vmem:[#allocation8 + $0x154] ss:$12 sps:$4 sm:$0xff]  }
 0x107   :  { %1670 = vmatprep.subr.bf16.mxu1 %v4136_v56 }
 0x109   :  { %1642 = vmatpush1.bf16.msra.mxu0 %v4092_v57  ;;  %v4199_v57 = vld [vmem:[#allocation8 + $0x170] ss:$12 sps:$4 sm:$0xff]  }
 0x10a   :  { %1643 = vmatprep.subr.bf16.mxu0 %v4100_v58  ;;  %1671 = vmatpush1.bf16.msra.mxu1 %v4134_v59  ;;  %v4200_v58 = vld [vmem:[#allocation8 + $0xb0] ss:$12 sps:$4 sm:$0xff]  }
 0x10b   :  { %2739 = vmatprep.subr.bf16.mxu1 %v4139_v60  ;;  %v4191_v59 = vld [vmem:[#allocation8 + $0x150] ss:$12 sps:$4 sm:$0xff]   ;;  %v4204_v60 = vld [vmem:[#allocation8 + $0x248] ss:$12 sps:$4 sm:$0xff]  }
 0x10d   :  { %1644 = vmatpush1.bf16.msra.mxu0 %v4098_v61  ;;  %3514 = vmatmul.mubr.msk.bf16.vlgmr.msra.gmra.mrb[12].mxu1 %vm1293_vm0, %v4393_v54  ;;  %v4198_v61 = vld [vmem:[#allocation8 + $0x16c] ss:$12 sps:$4 sm:$0xff]  }
 0x10e   :  { %1645 = vmatprep.subr.bf16.mxu0 %v4106_v62  ;;  %2740 = vmatpush1.bf16.msra.mxu1 %v4137_v63  ;;  %v4196_v62 = vld [vmem:[#allocation8 + $0x168] ss:$12 sps:$4 sm:$0xff]   ;;  %v4203_v63 = vld [vmem:[#allocation8 + $0x184] ss:$12 sps:$4 sm:$0xff]  }
 0x10f   :  { %2741 = vmatprep.subr.bf16.mxu1 %v4142_v1  ;;  %v283_v1 = vlaneseq }
 0x111   :  { %1646 = vmatpush1.bf16.msra.mxu0 %v4104_v2  ;;  %v4682_v2 = vshrl.u32 %v283_v1, 7 }
 0x112   :  { %1647 = vmatprep.subr.bf16.mxu0 %v4112_v3  ;;  %2742 = vmatpush1.bf16.msra.mxu1 %v4140_v4  ;;  %v4685_v4 = vld [vmem:[#allocation5] sm:$0xff] }
 0x113   :  { %2743 = vmatprep.subr.bf16.mxu1 %v4145_v5  ;;  %v285_v3 = vsub.s32 0, %v4682_v2  ;;  %v289_v5 = vsub.s32 1, %v4682_v2 }
 0x115   :  { %1648 = vmatpush1.bf16.msra.mxu0 %v4110_v6  ;;  %v286_v6 = vrot.slane %v4685_v4, %v285_v3 }
 0x116   :  { %1649 = vmatprep.subr.bf16.mxu0 %v4118_v8  ;;  %2744 = vmatpush1.bf16.msra.mxu1 %v4143_v9  ;;  %v290_v8 = vrot.slane %v4685_v4, %v289_v5 }
 0x117   :  { %2745 = vmatprep.subr.bf16.mxu1 %v4148_v10 }
 0x119   :  { %1650 = vmatpush1.bf16.msra.mxu0 %v4116_v11 }
 0x11a   :  { %1651 = vmatprep.subr.bf16.mxu0 %v4121_v12  ;;  %2746 = vmatpush1.bf16.msra.mxu1 %v4146_v13 }
 0x11b   :  { %2747 = vmatprep.subr.bf16.mxu1 %v4151_v14 }
 0x11d   :  { %1652 = vmatpush1.bf16.msra.mxu0 %v4119_v15 }
 0x11e   :  { %1653 = vmatprep.subr.bf16.mxu0 %v4127_v17  ;;  %2748 = vmatpush1.bf16.msra.mxu1 %v4149_v18 }
 0x11f   :  { %2749 = vmatprep.subr.bf16.mxu1 %v4154_v20 }
 0x121   :  { %1654 = vmatpush1.bf16.msra.mxu0 %v4125_v19 }
 0x122   :  { %1655 = vmatprep.subr.bf16.mxu0 %v4133_v21  ;;  %2750 = vmatpush1.bf16.msra.mxu1 %v4152_v22 }
 0x123   :  { %2751 = vmatprep.subr.bf16.mxu1 %v4157_v24 }
 0x125   :  { %1656 = vmatpush1.bf16.msra.mxu0 %v4131_v23 }
 0x126   :  { %2752 = vmatpush1.bf16.msra.mxu1 %v4155_v25  ;;  %3683 = vmatprep.subr.bf16.mxu0 %v4164_v26  ;;  %v293_v26 = vsub.s32 2, %v4682_v2 }
 0x127   :  { %2753 = vmatprep.subr.bf16.mxu1 %v4160_v27  ;;  %v297_v27 = vsub.s32 3, %v4682_v2 }
 0x128   :  { %1658 = vmatmul.mubr.bf16.vlgmr.msra.gmra.mrb[8].mxu0 %v4662_v7  ;;  %v4184_v7 = vld [vmem:[#allocation8 + $0x128] ss:$12 sps:$4 sm:$0xff]  }
 0x129   :  { %3684 = vmatpush3.bf16.msra.mxu0 %v4165_v28  ;;  %v294_v28 = vrot.slane %v4685_v4, %v293_v26 }
 0x12a   :  { %2754 = vmatpush1.bf16.msra.mxu1 %v4158_v29  ;;  %3685 = vmatprep.subr.bf16.mxu0 %v4169_v30  ;;  %v298_v29 = vrot.slane %v4685_v4, %v297_v27  ;;  %v4233_v27 = vld [vmem:[#allocation8 + $0x214] ss:$12 sps:$4 sm:$0xff]  }
 0x12b   :  { %2755 = vmatprep.subr.bf16.mxu1 %v4163_v31 }
 0x12d   :  { %3686 = vmatpush3.bf16.msra.mxu0 %v4170_v32 }
 0x12e   :  { %2756 = vmatpush1.bf16.msra.mxu1 %v4161_v33  ;;  %3687 = vmatprep.subr.bf16.mxu0 %v4174_v34 }
 0x12f   :  { %2757 = vmatprep.subr.bf16.mxu1 %v4168_v35 }
 0x131   :  { %3688 = vmatpush3.bf16.msra.mxu0 %v4175_v36 }
 0x132   :  { %2758 = vmatpush1.bf16.msra.mxu1 %v4166_v37  ;;  %3689 = vmatprep.subr.bf16.mxu0 %v4179_v16 }
 0x133   :  { %2759 = vmatprep.subr.bf16.mxu1 %v4173_v38 }
 0x135   :  { %3690 = vmatpush3.bf16.msra.mxu0 %v4180_v39 }
 0x136   :  { %2760 = vmatpush1.bf16.msra.mxu1 %v4171_v40  ;;  %3691 = vmatprep.subr.bf16.mxu0 %v4184_v7 }
 0x137   :  { %2761 = vmatprep.subr.bf16.mxu1 %v4178_v52 }
 0x139   :  { %3692 = vmatpush3.bf16.msra.mxu0 %v4185_v42 }
 0x13a   :  { %2762 = vmatpush1.bf16.msra.mxu1 %v4176_v41  ;;  %3693 = vmatprep.subr.bf16.mxu0 %v4189_v43 }
 0x13b   :  { %2763 = vmatprep.subr.bf16.mxu1 %v4183_v44 }
 0x13c   :  { %v1372_v49 = vpop.f32.mrb[0].mxu1 }
 0x13d   :  { %v1374_v51 = vpop.f32.mrb[1].mxu1  ;;  %3694 = vmatpush3.bf16.msra.mxu0 %v4190_v46 }
 0x13e   :  { %v1376_v54 = vpop.f32.mrb[2].mxu1  ;;  %2764 = vmatpush1.bf16.msra.mxu1 %v4181_v45  ;;  %3695 = vmatprep.subr.bf16.mxu0 %v4194_v48 }
 0x13f   :  { %v1377_v56 = vpop.f32.mrb[3].mxu1  ;;  %2765 = vmatprep.subr.bf16.mxu1 %v4188_v47  ;;  %v4205_v54 = vld [vmem:[#allocation8 + $0x188] ss:$12 sps:$4 sm:$0xff]  }
 0x140   :  { %v4208_v56 = vld [vmem:[#allocation8 + $0x19c] ss:$12 sps:$4 sm:$0xff]  }
 0x141   :  { %3696 = vmatpush3.bf16.msra.mxu0 %v4195_v50 }
 0x142   :  { %2766 = vmatpush1.bf16.msra.mxu1 %v4186_v53  ;;  %3697 = vmatprep.subr.bf16.mxu0 %v4199_v57  ;;  %v4201_v53 = vld [vmem:[#allocation8 + $0x180] ss:$12 sps:$4 sm:$0xff]  }
 0x143   :  { %2767 = vmatprep.subr.bf16.mxu1 %v4193_v55  ;;  %v4209_v57 = vld [vmem:[#allocation8 + $0x260] ss:$12 sps:$4 sm:$0xff]  }
 0x145   :  { %3698 = vmatpush3.bf16.msra.mxu0 %v4200_v58  ;;  %v4206_v58 = vld [vmem:[#allocation8 + $0x198] ss:$12 sps:$4 sm:$0xff]  }
 0x146   :  { %2768 = vmatpush1.bf16.msra.mxu1 %v4191_v59  ;;  %3705 = vmatprep.subr.bf16.mxu0 %v4204_v60  ;;  %v4210_v59 = vld [vmem:[#allocation8 + $0x1a0] ss:$12 sps:$4 sm:$0xff]  }
 0x147   :  { %2769 = vmatprep.subr.bf16.mxu1 %v4198_v61  ;;  %v4213_v61 = vld [vmem:[#allocation8 + $0x1b4] ss:$12 sps:$4 sm:$0xff]  }
 0x14a   :  { %2770 = vmatpush1.bf16.msra.mxu1 %v4196_v62  ;;  %v4214_v62 = vld [vmem:[#allocation8 + $0x278] ss:$12 sps:$4 sm:$0xff]  }
 0x14b   :  { %2780 = vmatprep.subr.bf16.mxu1 %v4203_v63 }
 0x16f   :  { %v1331_v9 = vpop.f32.mrb[0].mxu0 }
 0x170   :  { %v1332_v10 = vadd.f32 %v1331_v9, %v286_v6  ;;  %v1333_v11 = vpop.f32.mrb[1].mxu0  ;;  %v4211_v6 = vld [vmem:[#allocation8 + $0x1b0] ss:$12 sps:$4 sm:$0xff]   ;;  %v4218_v9 = vld [vmem:[#allocation8 + $0x1cc] ss:$12 sps:$4 sm:$0xff]  }
 0x171   :  { %v1334_v12 = vadd.f32 %v1333_v11, %v290_v8  ;;  %v1335_v13 = vpop.f32.mrb[2].mxu0  ;;  %v4215_v8 = vld [vmem:[#allocation8 + $0x1b8] ss:$12 sps:$4 sm:$0xff]  }
 0x172   :  { %v1373_v14 = vadd.f32 %v1372_v49, %v1332_v10  ;;  %v1336_v15 = vpop.f32.mrb[3].mxu0  ;;  %v4219_v10 = vld [vmem:[#allocation8 + $0x290] ss:$12 sps:$4 sm:$0xff]  }
 0x173   :  { %v1375_v17 = vadd.f32 %v1374_v51, %v1334_v12  ;;  %v4216_v12 = vld [vmem:[#allocation8 + $0x1c8] ss:$12 sps:$4 sm:$0xff]   ;;  %v4220_v13 = vld [vmem:[#allocation8 + $0x1d0] ss:$12 sps:$4 sm:$0xff]  }
 0x174   :  { %v1707_v18 = vpack.c.bf16 %v1373_v14, %v1373_v14  ;;  %v4223_v14 = vld [vmem:[#allocation8 + $0x1e4] ss:$12 sps:$4 sm:$0xff]   ;;  %v4224_v15 = vld [vmem:[#allocation8 + $0x2a8] ss:$12 sps:$4 sm:$0xff]  }
 0x175   :  { %v1708_v19 = vpack.c.bf16 %v1375_v17, %v1375_v17  ;;  %v4221_v17 = vld [vmem:[#allocation8 + $0x1e0] ss:$12 sps:$4 sm:$0xff]  }
 0x176   :  { %v1719_v20 = vand.u32 2147450879, %v1707_v18  ;;  %v1713_v50 = vmax.bf16 %v4545_v0, %v1707_v18  ;;  %v4225_v18 = vld [vmem:[#allocation8 + $0x1e8] ss:$12 sps:$4 sm:$0xff]  }
 0x177   :  { %v1720_v21 = vand.u32 2147450879, %v1708_v19  ;;  %v1714_v48 = vmax.bf16 %v4545_v0, %v1708_v19  ;;  %v4228_v19 = vld [vmem:[#allocation8 + $0x1fc] ss:$12 sps:$4 sm:$0xff]  }
 0x178   :  { %v1725_v22 = vsub.bf16 0, %v1719_v20  ;;  %v4229_v20 = vld [vmem:[#allocation8 + $0x2c0] ss:$12 sps:$4 sm:$0xff]  }
 0x179   :  { %v1726_v23 = vsub.bf16 0, %v1720_v21 }
 0x17a   :  { %v1732_v24 = vmul.bf16 1069105081, %v1725_v22 }
 0x17b   :  { %v1735_v25 = vmul.bf16 1069105081, %v1726_v23  ;;  %v4226_v23 = vld [vmem:[#allocation8 + $0x1f8] ss:$12 sps:$4 sm:$0xff]  }
 0x17c   :  { %4353 = vpow.bf16 %v1732_v24  ;;  %v4230_v24 = vld [vmem:[#allocation8 + $0x200] ss:$12 sps:$4 sm:$0xff]  }
 0x17d   :  { %4355 = vpow.bf16 %v1735_v25 }
 0x187   :  { %v4354_v30 = vpop.eup %4353 }
 0x188   :  { %v1454_v31 = vpop.f32.mrb[4].mxu1  ;;  %v4356_v32 = vpop.eup %4355  ;;  %v1749_v33 = vadd.bf16 1065369472, %v4354_v30  ;;  %v4235_v30 = vld [vmem:[#allocation8 + $0x218] ss:$12 sps:$4 sm:$0xff]  }
 0x189   :  { %v3804_v34 = vadd.f32 %v1454_v31, %v294_v28  ;;  %v1456_v35 = vpop.f32.mrb[5].mxu1  ;;  %v1750_v37 = vadd.bf16 1065369472, %v4356_v32  ;;  %v4234_v28 = vld [vmem:[#allocation8 + $0x2d8] ss:$12 sps:$4 sm:$0xff]  }
 0x18a   :  { %v3805_v36 = vadd.f32 %v1456_v35, %v298_v29  ;;  %v1458_v38 = vpop.f32.mrb[6].mxu1  ;;  %4357 = vlog2.bf16 %v1749_v33  ;;  %v4231_v29 = vld [vmem:[#allocation8 + $0x210] ss:$12 sps:$4 sm:$0xff]   ;;  %v4238_v31 = vld [vmem:[#allocation8 + $0x22c] ss:$12 sps:$4 sm:$0xff]  }
 0x18b   :  { %v4698_v16 = vpack.c.bf16 %v3804_v34, %v3804_v34  ;;  %v1459_v39 = vpop.f32.mrb[7].mxu1  ;;  %4359 = vlog2.bf16 %v1750_v37  ;;  %v4239_v32 = vld [vmem:[#allocation8 + $0x2f0] ss:$12 sps:$4 sm:$0xff]   ;;  %v301_v34 = vsub.s32 4, %v4682_v2  ;;  %v4236_v35 = vld [vmem:[#allocation8 + $0x228] ss:$12 sps:$4 sm:$0xff]  }
 0x18c   :  { %v4700_v40 = vpack.c.bf16 %v3805_v36, %v3805_v36  ;;  %v4240_v36 = vld [vmem:[#allocation8 + $0x230] ss:$12 sps:$4 sm:$0xff]   ;;  %v305_v37 = vsub.s32 5, %v4682_v2 }
 0x18d   :  { %v1721_v7 = vand.u32 2147450879, %v4698_v16  ;;  %v4243_v39 = vld [vmem:[#allocation8 + $0x244] ss:$12 sps:$4 sm:$0xff]  }
 0x18e   :  { %v1722_v52 = vand.u32 2147450879, %v4700_v40  ;;  %v1716_v22 = vmax.bf16 %v4545_v0, %v4700_v40  ;;  %v4250_v40 = vld [vmem:[#allocation8 + $0x3c8] ss:$12 sps:$4 sm:$0xff]  }
 0x18f   :  { %v1727_v41 = vsub.bf16 0, %v1721_v7  ;;  %v1715_v7 = vmax.bf16 %v4545_v0, %v4698_v16 }
 0x190   :  { %v1728_v42 = vsub.bf16 0, %v1722_v52  ;;  %v302_v52 = vrot.slane %v4685_v4, %v301_v34  ;;  %v4278_v34 = vld [vmem:[#allocation8 + $0x304] ss:$12 sps:$4 sm:$0xff]  }
 0x191   :  { %v1738_v44 = vmul.bf16 1069105081, %v1727_v41  ;;  %v4241_v41 = vld [vmem:[#allocation8 + $0x240] ss:$12 sps:$4 sm:$0xff]  }
 0x192   :  { %v1741_v43 = vmul.bf16 1069105081, %v1728_v42  ;;  %v306_v42 = vrot.slane %v4685_v4, %v305_v37  ;;  %v4281_v37 = vld [vmem:[#allocation8 + $0x318] ss:$12 sps:$4 sm:$0xff]  }
 0x194   :  { %4361 = vpow.bf16 %v1741_v43  ;;  %v4254_v43 = vld [vmem:[#allocation8 + $0x308] ss:$12 sps:$4 sm:$0xff]  }
 0x195   :  { %v4358_v45 = vpop.eup %4357  ;;  %4363 = vpow.bf16 %v1738_v44 }
 0x196   :  { %v4360_v46 = vpop.eup %4359  ;;  %v1757_v47 = vmul.bf16 1060192049, %v4358_v45  ;;  %v4246_v45 = vld [vmem:[#allocation8 + $0x25c] ss:$12 sps:$4 sm:$0xff]  }
 0x197   :  { %v1760_v49 = vmul.bf16 1060192049, %v4360_v46  ;;  %v4255_v46 = vld [vmem:[#allocation8 + $0x3e0] ss:$12 sps:$4 sm:$0xff]  }
 0x198   :  { %v1773_v55 = vadd.bf16 %v1757_v47, %v1713_v50  ;;  %v4244_v50 = vld [vmem:[#allocation8 + $0x258] ss:$12 sps:$4 sm:$0xff]  }
 0x199   :  { %v1774_v51 = vadd.bf16 %v1760_v49, %v1714_v48 }
 0x19b   :  { %2771 = vmatprep.mubr.bf16.mxu1 %v1774_v51  ;;  %2894 = vmatprep.mubr.bf16.mxu0 %v1774_v51  ;;  %v4259_v51 = vld [vmem:[#allocation8 + $0x320] ss:$12 sps:$4 sm:$0xff]  }
 0x19c   :  { %2772 = vmatmul.mubr.bf16.vlgmr.msra.gmra.mrb[8].mxu1 %v1773_v55  ;;  %2895 = vmatmul.mubr.bf16.vlgmr.msra.gmra.mrb[12].mxu0 %v1773_v55  ;;  %v4249_v55 = vld [vmem:[#allocation8 + $0x274] ss:$12 sps:$4 sm:$0xff]  }
 0x19d   :  { %2781 = vmatpush1.bf16.msra.mxu1 %v4201_v53  ;;  %3706 = vmatpush3.bf16.msra.mxu0 %v4205_v54 }
 0x19e   :  { %2782 = vmatprep.subr.bf16.mxu1 %v4208_v56  ;;  %3707 = vmatprep.subr.bf16.mxu0 %v4209_v57  ;;  %v4260_v56 = vld [vmem:[#allocation8 + $0x3f8] ss:$12 sps:$4 sm:$0xff]  }
 0x19f   :  { %v4362_v60 = vpop.eup %4361 }
 0x1a0   :  { %v1752_v63 = vadd.bf16 1065369472, %v4362_v60  ;;  %v4364_v1 = vpop.eup %4363 }
 0x1a1   :  { %2783 = vmatpush1.bf16.msra.mxu1 %v4206_v58  ;;  %3708 = vmatpush3.bf16.msra.mxu0 %v4210_v59  ;;  %v1751_v11 = vadd.bf16 1065369472, %v4364_v1  ;;  %v4253_v1 = vld [vmem:[#allocation8 + $0x28c] ss:$12 sps:$4 sm:$0xff]  }
 0x1a2   :  { %4365 = vlog2.bf16 %v1752_v63  ;;  %2784 = vmatprep.subr.bf16.mxu1 %v4213_v61  ;;  %3709 = vmatprep.subr.bf16.mxu0 %v4214_v62  ;;  %v4247_v61 = vld [vmem:[#allocation8 + $0x270] ss:$12 sps:$4 sm:$0xff]   ;;  %v4264_v62 = vld [vmem:[#allocation8 + $0x338] ss:$12 sps:$4 sm:$0xff]  }
 0x1a3   :  { %4367 = vlog2.bf16 %v1751_v11  ;;  %v4251_v11 = vld [vmem:[#allocation8 + $0x288] ss:$12 sps:$4 sm:$0xff]  }
 0x1a5   :  { %2785 = vmatpush1.bf16.msra.mxu1 %v4211_v6  ;;  %3710 = vmatpush3.bf16.msra.mxu0 %v4215_v8  ;;  %v4265_v6 = vld [vmem:[#allocation8 + $0x410] ss:$12 sps:$4 sm:$0xff]  }
 0x1a6   :  { %2786 = vmatprep.subr.bf16.mxu1 %v4218_v9  ;;  %3711 = vmatprep.subr.bf16.mxu0 %v4219_v10 }
 0x1a9   :  { %2787 = vmatpush1.bf16.msra.mxu1 %v4216_v12  ;;  %3712 = vmatpush3.bf16.msra.mxu0 %v4220_v13  ;;  %v4269_v12 = vld [vmem:[#allocation8 + $0x350] ss:$12 sps:$4 sm:$0xff]  }
 0x1aa   :  { %2788 = vmatprep.subr.bf16.mxu1 %v4223_v14  ;;  %3713 = vmatprep.subr.bf16.mxu0 %v4224_v15  ;;  %v4258_v13 = vld [vmem:[#allocation8 + $0x2a4] ss:$12 sps:$4 sm:$0xff]   ;;  %v4270_v14 = vld [vmem:[#allocation8 + $0x428] ss:$12 sps:$4 sm:$0xff]   ;;  %v4256_v15 = vld [vmem:[#allocation8 + $0x2a0] ss:$12 sps:$4 sm:$0xff]  }
 0x1ad   :  { %v4366_v21 = vpop.eup %4365  ;;  %2789 = vmatpush1.bf16.msra.mxu1 %v4221_v17  ;;  %3714 = vmatpush3.bf16.msra.mxu0 %v4225_v18  ;;  %v4274_v17 = vld [vmem:[#allocation8 + $0x368] ss:$12 sps:$4 sm:$0xff]  }
 0x1ae   :  { %v1766_v25 = vmul.bf16 1060192049, %v4366_v21  ;;  %2790 = vmatprep.subr.bf16.mxu1 %v4228_v19  ;;  %3715 = vmatprep.subr.bf16.mxu0 %v4229_v20  ;;  %v4368_v33 = vpop.eup %4367  ;;  %v4263_v18 = vld [vmem:[#allocation8 + $0x2bc] ss:$12 sps:$4 sm:$0xff]   ;;  %v4275_v19 = vld [vmem:[#allocation8 + $0x440] ss:$12 sps:$4 sm:$0xff]  }
 0x1af   :  { %v1763_v38 = vmul.bf16 1060192049, %v4368_v33  ;;  %v4261_v20 = vld [vmem:[#allocation8 + $0x2b8] ss:$12 sps:$4 sm:$0xff]   ;;  %v4279_v21 = vld [vmem:[#allocation8 + $0x380] ss:$12 sps:$4 sm:$0xff]  }
 0x1b0   :  { %v1776_v26 = vadd.bf16 %v1766_v25, %v1716_v22  ;;  %v4268_v22 = vld [vmem:[#allocation8 + $0x2d4] ss:$12 sps:$4 sm:$0xff]   ;;  %v4266_v25 = vld [vmem:[#allocation8 + $0x2d0] ss:$12 sps:$4 sm:$0xff]  }
 0x1b1   :  { %2791 = vmatpush1.bf16.msra.mxu1 %v4226_v23  ;;  %3716 = vmatpush3.bf16.msra.mxu0 %v4230_v24  ;;  %v4714_v44 = vadd.bf16 %v1763_v38, %v1715_v7  ;;  %v4280_v23 = vld [vmem:[#allocation8 + $0x458] ss:$12 sps:$4 sm:$0xff]   ;;  %v4289_v33 = vld [vmem:[#allocation8 + $0x3b0] ss:$12 sps:$4 sm:$0xff]  }
 0x1b2   :  { %2812 = vmatprep.mubr.bf16.mxu1 %v1776_v26  ;;  %2934 = vmatprep.mubr.bf16.mxu0 %v1776_v26  ;;  %v4284_v26 = vld [vmem:[#allocation8 + $0x398] ss:$12 sps:$4 sm:$0xff]  }
 0x1b3   :  { %2792 = vmatprep.subr.bf16.mxu1 %v4233_v27  ;;  %3717 = vmatprep.subr.bf16.mxu0 %v4234_v28 }
 0x1b5   :  { %2793 = vmatpush1.bf16.msra.mxu1 %v4231_v29  ;;  %3718 = vmatpush3.bf16.msra.mxu0 %v4235_v30  ;;  %v4273_v29 = vld [vmem:[#allocation8 + $0x2ec] ss:$12 sps:$4 sm:$0xff]   ;;  %v4285_v30 = vld [vmem:[#allocation8 + $0x470] ss:$12 sps:$4 sm:$0xff]  }
 0x1b6   :  { %2794 = vmatprep.subr.bf16.mxu1 %v4238_v31  ;;  %3719 = vmatprep.subr.bf16.mxu0 %v4239_v32  ;;  %v4271_v32 = vld [vmem:[#allocation8 + $0x2e8] ss:$12 sps:$4 sm:$0xff]  }
 0x1b9   :  { %2795 = vmatpush1.bf16.msra.mxu1 %v4236_v35  ;;  %3720 = vmatpush3.bf16.msra.mxu0 %v4240_v36  ;;  %v4276_v35 = vld [vmem:[#allocation8 + $0x300] ss:$12 sps:$4 sm:$0xff]   ;;  %v4283_v36 = vld [vmem:[#allocation8 + $0x31c] ss:$12 sps:$4 sm:$0xff]  }
 0x1ba   :  { %2796 = vmatprep.subr.bf16.mxu1 %v4243_v39  ;;  %3727 = vmatprep.subr.bf16.mxu0 %v4250_v40  ;;  %v4288_v39 = vld [vmem:[#allocation8 + $0x334] ss:$12 sps:$4 sm:$0xff]  }
 0x1bb   :  { %v1536_v47 = vpop.f32.mrb[4].mxu0 }
 0x1bc   :  { %v3806_v48 = vadd.f32 %v1536_v47, %v302_v52  ;;  %2935 = vmatmul.mubr.bf16.vlgmr.msra.gmra.mrb[16].mxu0 %v4714_v44  ;;  %v1538_v49 = vpop.f32.mrb[5].mxu0 }
 0x1bd   :  { %v3807_v16 = vadd.f32 %v1538_v49, %v306_v42  ;;  %2797 = vmatpush1.bf16.msra.mxu1 %v4241_v41  ;;  %3728 = vmatpush3.bf16.msra.mxu0 %v4254_v43  ;;  %v1540_v53 = vpop.f32.mrb[6].mxu0  ;;  %v4286_v43 = vld [vmem:[#allocation8 + $0x330] ss:$12 sps:$4 sm:$0xff]  }
 0x1be   :  { %v4717_v54 = vpack.c.bf16 %v3806_v48, %v3806_v48  ;;  %2798 = vmatprep.subr.bf16.mxu1 %v4246_v45  ;;  %3729 = vmatprep.subr.bf16.mxu0 %v4255_v46  ;;  %v1541_v57 = vpop.f32.mrb[7].mxu0  ;;  %v4293_v53 = vld [vmem:[#allocation8 + $0x360] ss:$12 sps:$4 sm:$0xff]  }
 0x1bf   :  { %v4719_v58 = vpack.c.bf16 %v3807_v16, %v3807_v16  ;;  %v4299_v57 = vld [vmem:[#allocation8 + $0x390] ss:$12 sps:$4 sm:$0xff]  }
 0x1c0   :  { %v1723_v59 = vand.u32 2147450879, %v4717_v54  ;;  %v1717_v38 = vmax.bf16 %v4545_v0, %v4717_v54  ;;  %v4298_v54 = vld [vmem:[#allocation8 + $0x37c] ss:$12 sps:$4 sm:$0xff]  }
 0x1c1   :  { %v1724_v60 = vand.u32 2147450879, %v4719_v58  ;;  %2799 = vmatpush1.bf16.msra.mxu1 %v4244_v50  ;;  %3730 = vmatpush3.bf16.msra.mxu0 %v4259_v51  ;;  %v1718_v7 = vmax.bf16 %v4545_v0, %v4719_v58  ;;  %v4290_v50 = vld [vmem:[#allocation8 + $0x348] ss:$12 sps:$4 sm:$0xff]   ;;  %v4295_v51 = vld [vmem:[#allocation8 + $0x364] ss:$12 sps:$4 sm:$0xff]  }
 0x1c2   :  { %v1729_v63 = vsub.bf16 0, %v1723_v59  ;;  %2800 = vmatprep.subr.bf16.mxu1 %v4249_v55  ;;  %3731 = vmatprep.subr.bf16.mxu0 %v4260_v56  ;;  %v4296_v55 = vld [vmem:[#allocation8 + $0x378] ss:$12 sps:$4 sm:$0xff]   ;;  %v4301_v56 = vld [vmem:[#allocation8 + $0x394] ss:$12 sps:$4 sm:$0xff]  }
 0x1c3   :  { %v1730_v8 = vsub.bf16 0, %v1724_v60  ;;  %v4304_v58 = vld [vmem:[#allocation8 + $0x3ac] ss:$12 sps:$4 sm:$0xff]   ;;  %v4302_v59 = vld [vmem:[#allocation8 + $0x3a8] ss:$12 sps:$4 sm:$0xff]  }
 0x1c4   :  { %v1744_v9 = vmul.bf16 1069105081, %v1729_v63  ;;  %v280_v60 = vld [vmem:[#allocation5 + $0x8] sm:$0x3] }
 0x1c5   :  { %v1747_v10 = vmul.bf16 1069105081, %v1730_v8  ;;  %2801 = vmatpush1.bf16.msra.mxu1 %v4247_v61  ;;  %3732 = vmatpush3.bf16.msra.mxu0 %v4264_v62  ;;  %v4307_v61 = vld [vmem:[#allocation8 + $0x3c4] ss:$12 sps:$4 sm:$0xff]   ;;  %v318_v62 = vrot.slane %v280_v60, %v285_v3  ;;  %v4305_v63 = vld [vmem:[#allocation8 + $0x3c0] ss:$12 sps:$4 sm:$0xff]  }
 0x1c6   :  { %4369 = vpow.bf16 %v1744_v9  ;;  %2802 = vmatprep.subr.bf16.mxu1 %v4253_v1  ;;  %3733 = vmatprep.subr.bf16.mxu0 %v4265_v6  ;;  %v322_v1 = vrot.slane %v280_v60, %v289_v5  ;;  %v4310_v6 = vld [vmem:[#allocation8 + $0x3dc] ss:$12 sps:$4 sm:$0xff]  }
 0x1c7   :  { %4371 = vpow.bf16 %v1747_v10  ;;  %v4311_v3 = vld [vmem:[#allocation8 + $0x3f0] ss:$12 sps:$4 sm:$0xff]   ;;  %v4314_v5 = vld [vmem:[#allocation8 + $0x408] ss:$12 sps:$4 sm:$0xff]  }
 0x1c9   :  { %2803 = vmatpush1.bf16.msra.mxu1 %v4251_v11  ;;  %3734 = vmatpush3.bf16.msra.mxu0 %v4269_v12  ;;  %v4308_v11 = vld [vmem:[#allocation8 + $0x3d8] ss:$12 sps:$4 sm:$0xff]  }
 0x1ca   :  { %2804 = vmatprep.subr.bf16.mxu1 %v4258_v13  ;;  %3735 = vmatprep.subr.bf16.mxu0 %v4270_v14  ;;  %v4313_v14 = vld [vmem:[#allocation8 + $0x3f4] ss:$12 sps:$4 sm:$0xff]  }
 0x1cd   :  { %2805 = vmatpush1.bf16.msra.mxu1 %v4256_v15  ;;  %3736 = vmatpush3.bf16.msra.mxu0 %v4274_v17 }
 0x1ce   :  { %2806 = vmatprep.subr.bf16.mxu1 %v4263_v18  ;;  %3737 = vmatprep.subr.bf16.mxu0 %v4275_v19  ;;  %v4316_v19 = vld [vmem:[#allocation8 + $0x40c] ss:$12 sps:$4 sm:$0xff]  }
 0x1d1   :  { %v4370_v24 = vpop.eup %4369  ;;  %2807 = vmatpush1.bf16.msra.mxu1 %v4261_v20  ;;  %3738 = vmatpush3.bf16.msra.mxu0 %v4279_v21  ;;  %v4319_v20 = vld [vmem:[#allocation8 + $0x424] ss:$12 sps:$4 sm:$0xff]   ;;  %v4317_v21 = vld [vmem:[#allocation8 + $0x420] ss:$12 sps:$4 sm:$0xff]  }
 0x1d2   :  { %v4372_v27 = vpop.eup %4371  ;;  %v1753_v28 = vadd.bf16 1065369472, %v4370_v24  ;;  %2808 = vmatprep.subr.bf16.mxu1 %v4268_v22  ;;  %3739 = vmatprep.subr.bf16.mxu0 %v4280_v23  ;;  %v4322_v22 = vld [vmem:[#allocation8 + $0x43c] ss:$12 sps:$4 sm:$0xff]   ;;  %v4320_v23 = vld [vmem:[#allocation8 + $0x438] ss:$12 sps:$4 sm:$0xff]  }
 0x1d3   :  { %v1754_v31 = vadd.bf16 1065369472, %v4372_v27  ;;  %v4325_v24 = vld [vmem:[#allocation8 + $0x454] ss:$12 sps:$4 sm:$0xff]  }
 0x1d4   :  { %4373 = vlog2.bf16 %v1753_v28  ;;  %v4326_v27 = vld [vmem:[#allocation8 + $0x468] ss:$12 sps:$4 sm:$0xff]  }
 0x1d5   :  { %4375 = vlog2.bf16 %v1754_v31  ;;  %2809 = vmatpush1.bf16.msra.mxu1 %v4266_v25  ;;  %3740 = vmatpush3.bf16.msra.mxu0 %v4284_v26  ;;  %v4323_v25 = vld [vmem:[#allocation8 + $0x450] ss:$12 sps:$4 sm:$0xff]   ;;  %v4328_v26 = vld [vmem:[#allocation8 + $0x46c] ss:$12 sps:$4 sm:$0xff]  }
 0x1d6   :  { %2810 = vmatprep.subr.bf16.mxu1 %v4273_v29  ;;  %3741 = vmatprep.subr.bf16.mxu0 %v4285_v30 }
 0x1d9   :  { %2811 = vmatpush1.bf16.msra.mxu1 %v4271_v32  ;;  %3742 = vmatpush3.bf16.msra.mxu0 %v4289_v33 }
 0x1da   :  { %2821 = vmatprep.subr.bf16.mxu1 %v4278_v34  ;;  %v4329_v34 = vld [vmem:[#allocation10 + $0x40] sm:$0xff]  }
 0x1db   :  { %3749 = vmatprep.subr.bf16.mxu0 %v4329_v34  ;;  %v4345_v34 = vld [vmem:[#allocation10 + $0x80] sm:$0xff]  }
 0x1dc   :  { %2813 = vmatmul.mubr.bf16.vlgmr.msra.gmra.mrb[8].mxu1 %v4714_v44  ;;  %v4292_v44 = vld [vmem:[#allocation8 + $0x34c] ss:$12 sps:$4 sm:$0xff]  }
 0x1dd   :  { %2822 = vmatpush1.bf16.msra.mxu1 %v4276_v35  ;;  %v4330_v35 = vld [vmem:[#allocation10] sm:$0xff]  }
 0x1de   :  { %2823 = vmatprep.subr.bf16.mxu1 %v4283_v36  ;;  %v4331_v36 = vld [vmem:[#allocation10 + $0x48] sm:$0xff]  }
 0x1df   :  { %v4374_v40 = vpop.eup %4373 }
 0x1e0   :  { %v4376_v52 = vpop.eup %4375  ;;  %v1769_v41 = vmul.bf16 1060192049, %v4374_v40  ;;  %v1700_v42 = vpop.f32.mrb[12].mxu1  ;;  %v4335_v40 = vld [vmem:[#allocation10 + $0x58] sm:$0xff]  }
 0x1e1   :  { %2824 = vmatpush1.bf16.msra.mxu1 %v4281_v37  ;;  %v1772_v45 = vmul.bf16 1060192049, %v4376_v52  ;;  %v1702_v46 = vpop.f32.mrb[13].mxu1  ;;  %v4332_v37 = vld [vmem:[#allocation10 + $0x8] sm:$0xff]   ;;  %v4337_v52 = vld [vmem:[#allocation10 + $0x60] sm:$0xff]  }
 0x1e2   :  { %v4728_v47 = vadd.bf16 %v1769_v41, %v1717_v38  ;;  %2825 = vmatprep.subr.bf16.mxu1 %v4288_v39  ;;  %v1704_v48 = vpop.f32.mrb[14].mxu1  ;;  %v4333_v38 = vld [vmem:[#allocation10 + $0x50] sm:$0xff]   ;;  %v4338_v41 = vld [vmem:[#allocation10 + $0x20] sm:$0xff]  }
 0x1e3   :  { %v1778_v49 = vadd.bf16 %v1772_v45, %v1718_v7  ;;  %v1705_v16 = vpop.f32.mrb[15].mxu1  ;;  %v4334_v39 = vld [vmem:[#allocation10 + $0x10] sm:$0xff]   ;;  %v4336_v7 = vld [vmem:[#allocation10 + $0x18] sm:$0xff]  }
 0x1e5   :  { %2826 = vmatpush1.bf16.msra.mxu1 %v4286_v43  ;;  %2974 = vmatprep.mubr.bf16.mxu0 %v1778_v49  ;;  %v4340_v43 = vld [vmem:[#allocation10 + $0x28] sm:$0xff]  }
 0x1e6   :  { %2975 = vmatmul.mubr.bf16.vlgmr.msra.gmra.mrb[20].mxu0 %v4728_v47  ;;  %2827 = vmatprep.subr.bf16.mxu1 %v4292_v44  ;;  %v4342_v44 = vld [vmem:[#allocation10 + $0x30] sm:$0xff]  }
 0x1e7   :  { %2853 = vmatprep.mubr.bf16.mxu1 %v1778_v49  ;;  %3750 = vmatpush3.bf16.msra.mxu0 %v4330_v35 }
 0x1e8   :  { %3751 = vmatprep.subr.bf16.mxu0 %v4331_v36  ;;  %v4346_v36 = vld [vmem:[#allocation10 + $0x88] sm:$0xff]  }
 0x1e9   :  { %2828 = vmatpush1.bf16.msra.mxu1 %v4290_v50 }
 0x1ea   :  { %2829 = vmatprep.subr.bf16.mxu1 %v4295_v51  ;;  %v4343_v51 = vld [vmem:[#allocation10 + $0x78] sm:$0xff]  }
 0x1eb   :  { %3752 = vmatpush3.bf16.msra.mxu0 %v4332_v37 }
 0x1ec   :  { %3753 = vmatprep.subr.bf16.mxu0 %v4333_v38  ;;  %v4347_v38 = vld [vmem:[#allocation10 + $0x90] sm:$0xff]  }
 0x1ed   :  { %2830 = vmatpush1.bf16.msra.mxu1 %v4293_v53  ;;  %v4344_v53 = vld [vmem:[#allocation10 + $0x38] sm:$0xff]  }
 0x1ee   :  { %2831 = vmatprep.subr.bf16.mxu1 %v4298_v54  ;;  %v4546_v54 = vmov 0.0  }
 0x1ef   :  { %3754 = vmatpush3.bf16.msra.mxu0 %v4334_v39 }
 0x1f0   :  { %3755 = vmatprep.subr.bf16.mxu0 %v4335_v40  ;;  %v4348_v40 = vld [vmem:[#allocation10 + $0x98] sm:$0xff]  }
 0x1f1   :  { %2832 = vmatpush1.bf16.msra.mxu1 %v4296_v55 }
 0x1f2   :  { %2833 = vmatprep.subr.bf16.mxu1 %v4301_v56 }
 0x1f3   :  { %3756 = vmatpush3.bf16.msra.mxu0 %v4336_v7  ;;  %v4349_v7 = vld [vmem:[#allocation10 + $0xa0] sm:$0xff]  }
 0x1f4   :  { %3757 = vmatprep.subr.bf16.mxu0 %v4337_v52  ;;  %v4350_v52 = vld [vmem:[#allocation10 + $0xa8] sm:$0xff]  }
 0x1f5   :  { %2834 = vmatpush1.bf16.msra.mxu1 %v4299_v57 }
 0x1f6   :  { %2835 = vmatprep.subr.bf16.mxu1 %v4304_v58 }
 0x1f7   :  { %3758 = vmatpush3.bf16.msra.mxu0 %v4338_v41  ;;  %v4351_v41 = vld [vmem:[#allocation10 + $0xb0] sm:$0xff]  }
 0x1f9   :  { %2836 = vmatpush1.bf16.msra.mxu1 %v4302_v59 }
 0x1fa   :  { %2837 = vmatprep.subr.bf16.mxu1 %v4307_v61  ;;  %v309_v61 = vsub.s32 6, %v4682_v2 }
 0x1fb   :  { %v1659_v8 = vpop.f32.mrb[8].mxu0 }
 0x1fc   :  { %v1660_v9 = vadd.f32 %v1659_v8, %v318_v62  ;;  %v1661_v10 = vpop.f32.mrb[9].mxu0  ;;  %v313_v62 = vsub.s32 7, %v4682_v2 }
 0x1fd   :  { %2838 = vmatpush1.bf16.msra.mxu1 %v4305_v63  ;;  %v1662_v12 = vadd.f32 %v1661_v10, %v322_v1  ;;  %v1663_v13 = vpop.f32.mrb[10].mxu0  ;;  %v310_v63 = vrot.slane %v4685_v4, %v309_v61 }
 0x1fe   :  { %2839 = vmatprep.subr.bf16.mxu1 %v4310_v6  ;;  %v1701_v15 = vadd.f32 %v1700_v42, %v1660_v9  ;;  %v1664_v17 = vpop.f32.mrb[11].mxu0  ;;  %v4339_v42 = vld [vmem:[#allocation10 + $0x68] sm:$0xff]   ;;  %v314_v1 = vrot.slane %v4685_v4, %v313_v62 }
 0x1ff   :  { %v4735_v18 = vadd.f32 %v1702_v46, %v1662_v12  ;;  %3759 = vmatprep.subr.bf16.mxu0 %v4339_v42  ;;  %v4341_v46 = vld [vmem:[#allocation10 + $0x70] sm:$0xff]  }
 0x200   :  { %3760 = vmatpush3.bf16.msra.mxu0 %v4340_v43  ;;  %v4352_v43 = vld [vmem:[#allocation10 + $0xb8] sm:$0xff]  }
 0x201   :  { %2840 = vmatpush1.bf16.msra.mxu1 %v4308_v11  ;;  %3761 = vmatprep.subr.bf16.mxu0 %v4341_v46 }
 0x202   :  { %2841 = vmatprep.subr.bf16.mxu1 %v4313_v14 }
 0x204   :  { %3762 = vmatpush3.bf16.msra.mxu0 %v4342_v44 }
 0x205   :  { %2842 = vmatpush1.bf16.msra.mxu1 %v4311_v3  ;;  %3763 = vmatprep.subr.bf16.mxu0 %v4343_v51 }
 0x206   :  { %2843 = vmatprep.subr.bf16.mxu1 %v4316_v19 }
 0x208   :  { %3764 = vmatpush3.bf16.msra.mxu0 %v4344_v53 }
 0x209   :  { %2844 = vmatpush1.bf16.msra.mxu1 %v4314_v5  ;;  %3780 = vmatprep.subr.bf16.mxu0 %v4546_v54 }
 0x20a   :  { %2845 = vmatprep.subr.bf16.mxu1 %v4319_v20 }
 0x20d   :  { %2846 = vmatpush1.bf16.msra.mxu1 %v4317_v21 }
 0x20e   :  { %2847 = vmatprep.subr.bf16.mxu1 %v4322_v22 }
 0x211   :  { %2848 = vmatpush1.bf16.msra.mxu1 %v4320_v23 }
 0x212   :  { %2849 = vmatprep.subr.bf16.mxu1 %v4325_v24 }
 0x215   :  { %2850 = vmatpush1.bf16.msra.mxu1 %v4323_v25 }
 0x216   :  { %2851 = vmatprep.subr.bf16.mxu1 %v4328_v26 }
 0x219   :  { %2852 = vmatpush1.bf16.msra.mxu1 %v4326_v27 }
 0x21c   :  { %2854 = vmatmul.mubr.bf16.vlgmr.msra.gmra.mrb[8].mxu1 %v4728_v47 }
 0x26f   :  { %v3699_v28 = vpop.f32.mrb[12].mxu0 }
 0x270   :  { %v3700_v29 = vpop.f32.mrb[13].mxu0 }
 0x271   :  { %v3701_v30 = vadd.f32 %v3700_v29, %v3699_v28  ;;  %v3702_v31 = vpop.f32.mrb[14].mxu0 }
 0x272   :  { %v3703_v32 = vpop.f32.mrb[15].mxu0 }
 0x273   :  { %v2897_v33 = vadd.f32 %v3701_v30, %v1701_v15 }
 0x28f   :  { %v3721_v45 = vpop.f32.mrb[16].mxu0 }
 0x290   :  { %v3722_v47 = vpop.f32.mrb[17].mxu0 }
 0x291   :  { %v3723_v48 = vadd.f32 %v3722_v47, %v3721_v45  ;;  %v3724_v49 = vpop.f32.mrb[18].mxu0 }
 0x292   :  { %v3725_v16 = vpop.f32.mrb[19].mxu0 }
 0x293   :  { %v2937_v50 = vadd.f32 %v3723_v48, %v2897_v33 }
 0x2b9   :  { %v3743_v55 = vpop.f32.mrb[20].mxu0 }
 0x2ba   :  { %v3744_v56 = vpop.f32.mrb[21].mxu0 }
 0x2bb   :  { %v3745_v57 = vadd.f32 %v3744_v56, %v3743_v55  ;;  %v3746_v58 = vpop.f32.mrb[22].mxu0 }
 0x2bc   :  { %v3747_v59 = vpop.f32.mrb[23].mxu0 }
 0x2bd   :  { %v2977_v60 = vadd.f32 %v3745_v57, %v2937_v50 }
 0x2bf   :  { %v2984_v2 = vpack.c.bf16 %v2977_v60, %v2977_v60 }
 0x2c1   :  { %v2990_v24 = vand.u32 2147450879, %v2984_v2  ;;  %v2987_v46 = vmax.bf16 %v4545_v0, %v2984_v2 }
 0x2c3   :  { %v2993_v25 = vsub.bf16 0, %v2990_v24 }
 0x2c5   :  { %v3001_v26 = vmul.bf16 1069105081, %v2993_v25 }
 0x2ef   :  { %v2855_v6 = vpop.f32.mrb[8].mxu1 }
 0x2f0   :  { %v3808_v8 = vadd.f32 %v2855_v6, %v310_v63  ;;  %v2857_v9 = vpop.f32.mrb[9].mxu1 }
 0x2f1   :  { %v3809_v10 = vadd.f32 %v2857_v9, %v314_v1  ;;  %v2859_v11 = vpop.f32.mrb[10].mxu1 }
 0x2f2   :  { %v2982_v12 = vpack.c.bf16 %v3808_v8, %v3808_v8  ;;  %v2860_v13 = vpop.f32.mrb[11].mxu1 }
 0x2f3   :  { %v2983_v14 = vpack.c.bf16 %v3809_v10, %v3809_v10 }
 0x2f4   :  { %v2988_v15 = vand.u32 2147450879, %v2982_v12  ;;  %v2985_v32 = vmax.bf16 %v4545_v0, %v2982_v12 }
 0x2f5   :  { %v2989_v17 = vand.u32 2147450879, %v2983_v14  ;;  %v2986_v30 = vmax.bf16 %v4545_v0, %v2983_v14 }
 0x2f6   :  { %v2991_v3 = vsub.bf16 0, %v2988_v15 }
 0x2f7   :  { %v2992_v19 = vsub.bf16 0, %v2989_v17 }
 0x2f8   :  { %v2995_v5 = vmul.bf16 1069105081, %v2991_v3 }
 0x2f9   :  { %v2998_v20 = vmul.bf16 1069105081, %v2992_v19 }
 0x2fa   :  { %4377 = vpow.bf16 %v2995_v5 }
 0x2fb   :  { %4379 = vpow.bf16 %v2998_v20 }
 0x305   :  { %v4378_v21 = vpop.eup %4377 }
 0x306   :  { %v4380_v22 = vpop.eup %4379  ;;  %v3003_v4 = vadd.bf16 1065369472, %v4378_v21 }
 0x307   :  { %v3004_v23 = vadd.bf16 1065369472, %v4380_v22 }
 0x308   :  { %4381 = vlog2.bf16 %v3003_v4 }
 0x309   :  { %4383 = vlog2.bf16 %v3004_v23 }
 0x30a   :  { %4385 = vpow.bf16 %v3001_v26 }
 0x313   :  { %v4382_v27 = vpop.eup %4381 }
 0x314   :  { %v4384_v28 = vpop.eup %4383  ;;  %v3008_v29 = vmul.bf16 1060192049, %v4382_v27 }
 0x315   :  { %v3011_v31 = vmul.bf16 1060192049, %v4384_v28  ;;  %v4386_v37 = vpop.eup %4385 }
 0x316   :  { %v3015_v35 = vadd.bf16 %v3008_v29, %v2985_v32  ;;  %v3005_v39 = vadd.bf16 1065369472, %v4386_v37 }
 0x317   :  { %v3016_v33 = vadd.bf16 %v3011_v31, %v2986_v30 }
 0x318   :  { %4387 = vlog2.bf16 %v3005_v39 }
 0x319   :  { %3242 = vmatprep.mubr.bf16.mxu0 %v3016_v33 }
 0x31a   :  { %3243 = vmatmul.mubr.bf16.vlgmr.msra.gmra.mrb[24].mxu0 %v3015_v35 }
 0x31b   :  { %3781 = vmatpush3.bf16.msra.mxu0 %v4345_v34  ;;  %3796 = vmatprep.mubr.msk.bf16.mxu0 %vm4547_vm1, %v4546_v54 }
 0x31c   :  { %3782 = vmatprep.subr.bf16.mxu0 %v4546_v54 }
 0x31f   :  { %3783 = vmatpush3.bf16.msra.mxu0 %v4346_v36 }
 0x320   :  { %3784 = vmatprep.subr.bf16.mxu0 %v4546_v54 }
 0x323   :  { %3785 = vmatpush3.bf16.msra.mxu0 %v4347_v38  ;;  %v4388_v42 = vpop.eup %4387 }
 0x324   :  { %3786 = vmatprep.subr.bf16.mxu0 %v4546_v54  ;;  %v3014_v45 = vmul.bf16 1060192049, %v4388_v42 }
 0x326   :  { %v3017_v47 = vadd.bf16 %v3014_v45, %v2987_v46 }
 0x327   :  { %3787 = vmatpush3.bf16.msra.mxu0 %v4348_v40 }
 0x328   :  { %3788 = vmatprep.subr.bf16.mxu0 %v4546_v54 }
 0x32b   :  { %3789 = vmatpush3.bf16.msra.mxu0 %v4349_v7 }
 0x32c   :  { %3790 = vmatprep.subr.bf16.mxu0 %v4546_v54 }
 0x32f   :  { %3791 = vmatpush3.bf16.msra.mxu0 %v4350_v52 }
 0x330   :  { %3792 = vmatprep.subr.bf16.mxu0 %v4546_v54 }
 0x333   :  { %3793 = vmatpush3.bf16.msra.mxu0 %v4351_v41 }
 0x334   :  { %3794 = vmatprep.subr.bf16.mxu0 %v4546_v54 }
 0x337   :  { %3795 = vmatpush3.bf16.msra.mxu0 %v4352_v43 }
 0x33a   :  { %3797 = vmatmul.mubr.bf16.vlgmr.msra.gmra.mrb[28].mxu0 %v3017_v47 }
 0x3ed   :  { %v3765_v44 = vpop.f32.mrb[24].mxu0 }
 0x3ee   :  { %v3766_v48 = vpop.f32.mrb[25].mxu0 }
 0x3ef   :  { %v3767_v49 = vadd.f32 %v3766_v48, %v3765_v44  ;;  %v3768_v16 = vpop.f32.mrb[26].mxu0 }
 0x3f0   :  { %v3769_v50 = vpop.f32.mrb[27].mxu0 }
 0x3f1   :  { %v3245_v51 = vadd.f32 %v3767_v49, %v4735_v18 }
 0x40d   :  { %v3284_v53 = vpop.f32.mrb[28].mxu0 }
 0x40e   :  { %v3285_v55 = vadd.f32 %v3284_v53, %v3245_v51  ;;  %v3798_v56 = vpop.f32.mrb[29].mxu0 }
 0x40f   :  { %v3287_v57 = vpop.f32.mrb[30].mxu0 }
 0x410   :  { %v3291_v58 = vand.u32 2147483647, %v3285_v55  ;;  %v3799_v59 = vpop.f32.mrb[31].mxu0  ;;  %v3290_v63 = vmax.f32 %v3285_v55, 0.0 }
 0x412   :  { %v3292_v60 = vsub.f32 0.0, %v3291_v58 }
 0x414   :  { %v3293_v54 = vmul.f32 1.442695, %v3292_v60 }
 0x416   :  { %4389 = vpow2.f32 %v3293_v54 }
 0x420   :  { %v4390_v0 = vpop.eup %4389 }
 0x421   :  { %v3295_v61 = vadd.f32 1.0, %v4390_v0 }
 0x423   :  { %4391 = vlog2.f32 %v3295_v61 }
 0x42d   :  { %v4392_v62 = vpop.eup %4391 }
 0x42e   :  { %v3297_v1 = vmul.f32 0.6931472, %v4392_v62 }
 0x430   :  { %v3298_v6 = vadd.f32 %v3297_v1, %v3290_v63 }
 0x432   :  { %3299 = vst [vmem:[#allocation11] sm:$0xff] %v3298_v6 }
 0x433   :  { %4515 = shalt.err (!%p4512_p2)
}
 0x434   :  { %s4516_s7 = scalar_lea.hbm %s4772_s5, 128 }
 0x435   :  { %p4517_p3 = scmp.ne.s32.totalorder %s4772_s5, %s4516_s7  ;;  %p4520_p4 = scmp.lt.u32.totalorder %s4516_s7, %s4772_s5 }
 0x437   :  { %p4522_p5 = pnand %p4520_p4, %p4517_p3 }
 0x439   :  { %4525 = shalt.err (!%p4522_p5)
}
 0x43a   :  { %3309 = dma.vmem_to_hbm [thread:$0]  %s3307_s3, 128, %s4772_s5, [#allocation4]  }
 0x43b   :  { %4532 = dma.done.wait [#allocation4], 128  }
 0x43c   :  { %4533 = vsyncadd [#allocation4], 4294967168 }
 0x43d   :  { %3313 = vsyncpa [#allocation3], 1 }
 0x43e   :  { %3314 = vsyncpa [#allocation6], 1 }
 0x43f   :  { %3315 = vsyncpa [#allocation9], 1 }
 0x440   :  { %3316 = vsyncpa [#allocation4], 1 }

</bundles_post_ra>
